<compile_context>
chip_gen: v7x
topology: tpu7x:2x2x1
jax: 0.10.0
libtpu: 0.0.40
codegen_flags: <defaults>
</compile_context>

<pallas_src>
import functools

import jax
import jax.numpy as jnp
import numpy as np
from jax.experimental import pallas as pl
from jax.experimental.pallas import tpu as pltpu

# Module dimensions.
D_IN = 880
D_IN_PAD = 896            # 880 zero-padded to a multiple of 128
D1, D2, D3, D4 = 512, 256, 128, 64
D_QKV = 3 * D4            # fused q|k|v projection width
VEC_COLS = 512            # packed small-vector array is (8, VEC_COLS)

# Row layout of the packed (8, 512) vector array.
ROW_SHIFT = (0, 1, 2, 3)  # folded (b*bn_scale + bn_shift) for fc1..fc4
ROW_BQKV = 4              # concat(bq, bk, bv), length 192
ROW_WOUT = 5              # output-layer weight row, length 64
ROW_BOUT = 6              # output-layer bias, length 1


# ----------------------------------------------------------------------------
# Kernels
# ----------------------------------------------------------------------------
def mlp_stage_kernel(x_ref, w1_ref, w2_ref, w3_ref, w4_ref, vec_ref, h_ref):
    """fc1..fc4 with BatchNorm folded into weights/shifts, ReLU after each layer."""

    def layer(h, w_ref, row, d_out):
        shift = vec_ref[row:row + 1, :d_out]                       # (1, d_out) f32
        y = jnp.dot(h.astype(jnp.bfloat16), w_ref[...],
                    preferred_element_type=jnp.float32) + shift
        return jnp.maximum(y, 0.0)                                 # ReLU (f32 on VPU)

    h = x_ref[...]
    # TODO(synk): nn.Dropout(0.46) is identity in eval mode; training-mode RNG mask omitted.
    h = layer(h, w1_ref, ROW_SHIFT[0], D1)
    h = layer(h, w2_ref, ROW_SHIFT[1], D2)
    h = layer(h, w3_ref, ROW_SHIFT[2], D3)
    h = layer(h, w4_ref, ROW_SHIFT[3], D4)
    h_ref[...] = h


def attention_head_kernel(h_ref, wqkv_ref, vec_ref, out_ref):
    """Batch-wide attention (scores are (B,B)) + output projection + sigmoid."""
    h = h_ref[...]                                                 # (B, 64) f32

    # Fused q/k/v projection: one (B,64) @ (64,192) matmul.
    qkv = jnp.dot(h.astype(jnp.bfloat16), wqkv_ref[...],
                  preferred_element_type=jnp.float32)
    qkv = qkv + vec_ref[ROW_BQKV:ROW_BQKV + 1, :D_QKV]
    q = qkv[:, 0:D4].astype(jnp.bfloat16)
    k = qkv[:, D4:2 * D4].astype(jnp.bfloat16)
    v = qkv[:, 2 * D4:3 * D4].astype(jnp.bfloat16)

    scale = jnp.float32(1.0 / 8.0)                                 # 1/sqrt(64), exact
    scores = jnp.dot(q, k.T, preferred_element_type=jnp.float32) * scale   # (B, B)
    scores = scores - jnp.max(scores, axis=-1, keepdims=True)
    e = jnp.exp(scores)
    denom = jnp.sum(e, axis=-1, keepdims=True)
    attn = e * pl.reciprocal(denom, approx=True)                   # EUP reciprocal
    attn_out = jnp.dot(attn.astype(jnp.bfloat16), v,
                       preferred_element_type=jnp.float32)         # (B, 64)

    # Final 64 -> 1 projection as a VPU multiply-reduce (avoid an N=1 MXU matmul).
    wo = vec_ref[ROW_WOUT:ROW_WOUT + 1, :D4]                       # (1, 64)
    bo = vec_ref[ROW_BOUT:ROW_BOUT + 1, 0:1]                       # (1, 1)
    logits = jnp.sum(attn_out * wo, axis=-1, keepdims=True) + bo   # (B, 1)
    out_ref[...] = jax.nn.sigmoid(logits)


# ----------------------------------------------------------------------------
# Parameter construction (PyTorch-equivalent init) and inference-time packing
# ----------------------------------------------------------------------------
def init_linear(key, in_f, out_f):
    """PyTorch nn.Linear init: U(-1/sqrt(in), 1/sqrt(in)) for W and b."""
    kw, kb = jax.random.split(key)
    bound = 1.0 / float(np.sqrt(in_f))
    w = jax.random.uniform(kw, (out_f, in_f), jnp.float32, -bound, bound)
    b = jax.random.uniform(kb, (out_f,), jnp.float32, -bound, bound)
    return w, b


def make_params(key):
    dims = [(D_IN, D1), (D1, D2), (D2, D3), (D3, D4)]
    keys = jax.random.split(key, 9)
    params = {}
    for i, (din, dout) in enumerate(dims):
        w, b = init_linear(keys[i], din, dout)
        # BatchNorm1d (eval mode) defaults: gamma=1, beta=0, running_mean=0, running_var=1.
        gamma = jnp.ones((dout,), jnp.float32)
        beta = jnp.zeros((dout,), jnp.float32)
        mean = jnp.zeros((dout,), jnp.float32)
        var = jnp.ones((dout,), jnp.float32)
        eps = 1e-5
        bn_scale = gamma / jnp.sqrt(var + eps)
        bn_shift = beta - mean * bn_scale
        params[f"fc{i+1}"] = (w, b, bn_scale, bn_shift)
    params["q"] = init_linear(keys[4], D4, D4)
    params["k"] = init_linear(keys[5], D4, D4)
    params["v"] = init_linear(keys[6], D4, D4)
    params["out"] = init_linear(keys[7], D4, 1)
    return params


def prepare_inference_params(params):
    """Fold BN + bias into weights, fuse qkv, cast weights to bf16, pack small vectors."""
    w_mlp, shifts = [], []
    for i in range(4):
        w, b, s, t = params[f"fc{i+1}"]          # w: (out, in) f32
        wt = w.T * s[None, :]                    # fold BN scale into weight columns
        shift = b * s + t                        # fold bias + BN shift
        if i == 0:
            wt = jnp.pad(wt, ((0, D_IN_PAD - D_IN), (0, 0)))   # K: 880 -> 896
        w_mlp.append(wt.astype(jnp.bfloat16))
        shifts.append(shift.astype(jnp.float32))

    wq, bq = params["q"]
    wk, bk = params["k"]
    wv, bv = params["v"]
    wqkv = jnp.concatenate([wq.T, wk.T, wv.T], axis=1).astype(jnp.bfloat16)   # (64, 192)
    bqkv = jnp.concatenate([bq, bk, bv]).astype(jnp.float32)                  # (192,)
    wo, bo = params["out"]                                                    # (1,64), (1,)

    rows = shifts + [bqkv, wo.reshape(-1), bo.reshape(-1)]
    vec = jnp.zeros((8, VEC_COLS), jnp.float32)
    for r, row_vals in enumerate(rows):
        vec = vec.at[r, :row_vals.shape[0]].set(row_vals.astype(jnp.float32))

    return {
        "w_mlp": w_mlp,
        "shifts": shifts,
        "wqkv": wqkv,
        "bqkv": bqkv,
        "w_out": wo.reshape(-1).astype(jnp.float32),
        "b_out": bo.reshape(()).astype(jnp.float32),
        "vec": vec,
    }


# ----------------------------------------------------------------------------
# Wrapper
# ----------------------------------------------------------------------------
def _round_up(x, m):
    return (x + m - 1) // m * m


@jax.jit
def mlp_forward(x, infer):
    B = x.shape[0]
    # Batch tile: multiple of 8 (f32 sublane); 256 max fills v6e/v7x MXU M dim.
    tb = min(256, _round_up(B, 8))
    bp = _round_up(B, tb)
    xp = jnp.pad(x, ((0, bp - B), (0, D_IN_PAD - D_IN)))

    w1, w2, w3, w4 = infer["w_mlp"]
    vec = infer["vec"]

    # Stage 1: fc1..fc4 over a parallel batch grid, weights resident in VMEM.
    h = pl.pallas_call(
        mlp_stage_kernel,
        out_shape=jax.ShapeDtypeStruct((bp, D4), jnp.float32),
        grid_spec=pltpu.PrefetchScalarGridSpec(
            num_scalar_prefetch=0,
            grid=(bp // tb,),
            in_specs=[
                pl.BlockSpec((tb, D_IN_PAD), lambda i: (i, 0)),
                pl.BlockSpec((D_IN_PAD, D1), lambda i: (0, 0)),
                pl.BlockSpec((D1, D2), lambda i: (0, 0)),
                pl.BlockSpec((D2, D3), lambda i: (0, 0)),
                pl.BlockSpec((D3, D4), lambda i: (0, 0)),
                pl.BlockSpec((8, VEC_COLS), lambda i: (0, 0)),
            ],
            out_specs=pl.BlockSpec((tb, D4), lambda i: (i, 0)),
        ),
        compiler_params=pltpu.CompilerParams(
            dimension_semantics=("parallel",)),
    )(xp, w1, w2, w3, w4, vec)

    h = h[:B]  # drop batch padding before the batch-coupled attention stage

    # Stage 2: attention is computed across the WHOLE batch (scores are (B,B)),
    # exactly matching the PyTorch module, so it runs as one un-tiled block.
    out = pl.pallas_call(
        attention_head_kernel,
        out_shape=jax.ShapeDtypeStruct((B, 1), jnp.float32),
        in_specs=[pl.BlockSpec(memory_space=pltpu.MemorySpace.VMEM)] * 3,
        out_specs=pl.BlockSpec(memory_space=pltpu.MemorySpace.VMEM),
    )(h, infer["wqkv"], vec)
    return out


# ----------------------------------------------------------------------------
# References
# ----------------------------------------------------------------------------
def mlp_reference_f32(x, params):
    """Pure f32 reference of the original PyTorch module (eval mode)."""
    h = x
    for i in range(4):
        w, b, s, t = params[f"fc{i+1}"]
        h = jnp.maximum((h @ w.T + b) * s + t, 0.0)
    wq, bq = params["q"]
    wk, bk = params["k"]
    wv, bv = params["v"]
    q, k, v = h @ wq.T + bq, h @ wk.T + bk, h @ wv.T + bv
    scores = (q @ k.T) / jnp.sqrt(jnp.float32(q.shape[-1]))
    attn = jax.nn.softmax(scores, axis=-1)
    ao = attn @ v
    wo, bo = params["out"]
    return jax.nn.sigmoid(ao @ wo.T + bo)


def mlp_reference_bf16(x, infer):
    """Reference that emulates the kernel's bf16-operand / f32-accumulate numerics."""
    h = jnp.pad(x, ((0, 0), (0, D_IN_PAD - D_IN)))
    for w, shift in zip(infer["w_mlp"], infer["shifts"]):
        h = jnp.maximum(
            jnp.dot(h.astype(jnp.bfloat16), w,
                    preferred_element_type=jnp.float32) + shift, 0.0)
    qkv = jnp.dot(h.astype(jnp.bfloat16), infer["wqkv"],
                  preferred_element_type=jnp.float32) + infer["bqkv"]
    q = qkv[:, 0:D4].astype(jnp.bfloat16)
    k = qkv[:, D4:2 * D4].astype(jnp.bfloat16)
    v = qkv[:, 2 * D4:3 * D4].astype(jnp.bfloat16)
    scores = jnp.dot(q, k.T, preferred_element_type=jnp.float32) * (1.0 / 8.0)
    scores = scores - jnp.max(scores, axis=-1, keepdims=True)
    e = jnp.exp(scores)
    attn = e / jnp.sum(e, axis=-1, keepdims=True)
    ao = jnp.dot(attn.astype(jnp.bfloat16), v, preferred_element_type=jnp.float32)
    logits = jnp.sum(ao * infer["w_out"][None, :], axis=-1, keepdims=True) + infer["b_out"]
    return jax.nn.sigmoid(logits)


# ----------------------------------------------------------------------------
if __name__ == "__main__":
    key = jax.random.PRNGKey(0)
    kp, kx = jax.random.split(key)
    params = make_params(kp)
    infer = prepare_inference_params(params)

    B = 8
    x = jax.random.normal(kx, (B, D_IN), jnp.float32)

    out = jax.block_until_ready(mlp_forward(x, infer))
    assert out.shape == (B, 1)

    ref_bf16 = jax.block_until_ready(mlp_reference_bf16(x, infer))
    ref_f32 = jax.block_until_ready(mlp_reference_f32(x, params))

    # Tight check vs. a reference with identical bf16/f32 numerics (approx reciprocal
    # in the kernel is the only intentional deviation), and a looser sanity check vs.
    # the pure-f32 module semantics.
    np.testing.assert_allclose(np.asarray(out), np.asarray(ref_bf16), rtol=2e-3, atol=2e-3)
    np.testing.assert_allclose(np.asarray(out), np.asarray(ref_f32), rtol=3e-2, atol=3e-2)
    print("KERNEL_OK")
</pallas_src>

<mosaic_0001>
module attributes {stable_mosaic.version = 11 : i64} {
  func.func @mlp_stage_kernel(%arg0: i32, %arg1: memref<8x896xf32, #tpu.memory_space<vmem>>, %arg2: memref<896x512xbf16, #tpu.memory_space<vmem>>, %arg3: memref<512x256xbf16, #tpu.memory_space<vmem>>, %arg4: memref<256x128xbf16, #tpu.memory_space<vmem>>, %arg5: memref<128x64xbf16, #tpu.memory_space<vmem>>, %arg6: memref<8x512xf32, #tpu.memory_space<vmem>>, %arg7: memref<8x64xf32, #tpu.memory_space<vmem>>) attributes {dimension_semantics = [#tpu.dimension_semantics<parallel>], iteration_bounds = array<i64: 1>, scalar_prefetch = 0 : i64, scratch_operands = 0 : i64, tpu.core_type = #tpu.core_type<tc>, window_params = [{transform_indices = @transform_0, window_bounds = array<i64: 8, 896>}, {pipeline_mode = #tpu.pipeline_mode<synchronous>, transform_indices = @transform_1, window_bounds = array<i64: 896, 512>}, {pipeline_mode = #tpu.pipeline_mode<synchronous>, transform_indices = @transform_2, window_bounds = array<i64: 512, 256>}, {pipeline_mode = #tpu.pipeline_mode<synchronous>, transform_indices = @transform_3, window_bounds = array<i64: 256, 128>}, {pipeline_mode = #tpu.pipeline_mode<synchronous>, transform_indices = @transform_4, window_bounds = array<i64: 128, 64>}, {pipeline_mode = #tpu.pipeline_mode<synchronous>, transform_indices = @transform_5, window_bounds = array<i64: 8, 512>}, {transform_indices = @transform_6, window_bounds = array<i64: 8, 64>}]} {
    %c0 = arith.constant 0 : index
    %c0_0 = arith.constant 0 : index
    %0 = vector.load %arg1[%c0, %c0_0] : memref<8x896xf32, #tpu.memory_space<vmem>>, vector<8x896xf32>
    %c0_1 = arith.constant 0 : index
    %c0_2 = arith.constant 0 : index
    %1 = vector.load %arg6[%c0_1, %c0_2] : memref<8x512xf32, #tpu.memory_space<vmem>>, vector<1x512xf32>
    %2 = arith.truncf %0 : vector<8x896xf32> to vector<8x896xbf16>
    %c0_3 = arith.constant 0 : index
    %c0_4 = arith.constant 0 : index
    %3 = vector.load %arg2[%c0_3, %c0_4] : memref<896x512xbf16, #tpu.memory_space<vmem>>, vector<896x512xbf16>
    %cst = arith.constant dense<0.000000e+00> : vector<8x512xf32>
    %4 = tpu.matmul %2, %3, %cst {dimension_numbers = #tpu.dot_dimension_numbers<[1], [0], [0], [1], [0, 0, 1, 1], [], []>} : vector<8x896xbf16>, vector<896x512xbf16>, vector<8x512xf32> -> vector<8x512xf32>
    %5 = vector.broadcast %1 : vector<1x512xf32> to vector<8x512xf32>
    %6 = arith.addf %4, %5 : vector<8x512xf32>
    %cst_5 = arith.constant 0.000000e+00 : f32
    %7 = vector.broadcast %cst_5 : f32 to vector<8x512xf32>
    %8 = arith.maximumf %6, %7 : vector<8x512xf32>
    %c1 = arith.constant 1 : index
    %c0_6 = arith.constant 0 : index
    %9 = vector.load %arg6[%c1, %c0_6] : memref<8x512xf32, #tpu.memory_space<vmem>>, vector<1x256xf32>
    %10 = arith.truncf %8 : vector<8x512xf32> to vector<8x512xbf16>
    %c0_7 = arith.constant 0 : index
    %c0_8 = arith.constant 0 : index
    %11 = vector.load %arg3[%c0_7, %c0_8] : memref<512x256xbf16, #tpu.memory_space<vmem>>, vector<512x256xbf16>
    %cst_9 = arith.constant dense<0.000000e+00> : vector<8x256xf32>
    %12 = tpu.matmul %10, %11, %cst_9 {dimension_numbers = #tpu.dot_dimension_numbers<[1], [0], [0], [1], [0, 0, 1, 1], [], []>} : vector<8x512xbf16>, vector<512x256xbf16>, vector<8x256xf32> -> vector<8x256xf32>
    %13 = vector.broadcast %9 : vector<1x256xf32> to vector<8x256xf32>
    %14 = arith.addf %12, %13 : vector<8x256xf32>
    %cst_10 = arith.constant 0.000000e+00 : f32
    %15 = vector.broadcast %cst_10 : f32 to vector<8x256xf32>
    %16 = arith.maximumf %14, %15 : vector<8x256xf32>
    %c2 = arith.constant 2 : index
    %c0_11 = arith.constant 0 : index
    %17 = vector.load %arg6[%c2, %c0_11] : memref<8x512xf32, #tpu.memory_space<vmem>>, vector<1x128xf32>
    %18 = arith.truncf %16 : vector<8x256xf32> to vector<8x256xbf16>
    %c0_12 = arith.constant 0 : index
    %c0_13 = arith.constant 0 : index
    %19 = vector.load %arg4[%c0_12, %c0_13] : memref<256x128xbf16, #tpu.memory_space<vmem>>, vector<256x128xbf16>
    %cst_14 = arith.constant dense<0.000000e+00> : vector<8x128xf32>
    %20 = tpu.matmul %18, %19, %cst_14 {dimension_numbers = #tpu.dot_dimension_numbers<[1], [0], [0], [1], [0, 0, 1, 1], [], []>} : vector<8x256xbf16>, vector<256x128xbf16>, vector<8x128xf32> -> vector<8x128xf32>
    %21 = vector.broadcast %17 : vector<1x128xf32> to vector<8x128xf32>
    %22 = arith.addf %20, %21 : vector<8x128xf32>
    %cst_15 = arith.constant 0.000000e+00 : f32
    %23 = vector.broadcast %cst_15 : f32 to vector<8x128xf32>
    %24 = arith.maximumf %22, %23 : vector<8x128xf32>
    %c3 = arith.constant 3 : index
    %c0_16 = arith.constant 0 : index
    %25 = vector.load %arg6[%c3, %c0_16] : memref<8x512xf32, #tpu.memory_space<vmem>>, vector<1x64xf32>
    %26 = arith.truncf %24 : vector<8x128xf32> to vector<8x128xbf16>
    %c0_17 = arith.constant 0 : index
    %c0_18 = arith.constant 0 : index
    %27 = vector.load %arg5[%c0_17, %c0_18] : memref<128x64xbf16, #tpu.memory_space<vmem>>, vector<128x64xbf16>
    %cst_19 = arith.constant dense<0.000000e+00> : vector<8x64xf32>
    %28 = tpu.matmul %26, %27, %cst_19 {dimension_numbers = #tpu.dot_dimension_numbers<[1], [0], [0], [1], [0, 0, 1, 1], [], []>} : vector<8x128xbf16>, vector<128x64xbf16>, vector<8x64xf32> -> vector<8x64xf32>
    %29 = vector.broadcast %25 : vector<1x64xf32> to vector<8x64xf32>
    %30 = arith.addf %28, %29 : vector<8x64xf32>
    %cst_20 = arith.constant 0.000000e+00 : f32
    %31 = vector.broadcast %cst_20 : f32 to vector<8x64xf32>
    %32 = arith.maximumf %30, %31 : vector<8x64xf32>
    %c0_21 = arith.constant 0 : index
    %c0_22 = arith.constant 0 : index
    %33 = vector.load %arg7[%c0_21, %c0_22] : memref<8x64xf32, #tpu.memory_space<vmem>>, vector<8x64xf32>
    tpu.vector_store %arg7[%c0_21, %c0_22], %32 {strides = array<i32>} : memref<8x64xf32, #tpu.memory_space<vmem>>, vector<8x64xf32>,
    return
  }
  func.func @transform_0(%arg0: i32) -> (i32, i32) {
    %c0_i32 = arith.constant 0 : i32
    %c0_i32_0 = arith.constant 0 : i32
    return %arg0, %c0_i32 : i32, i32
  }
  func.func @transform_1(%arg0: i32) -> (i32, i32) {
    %c0_i32 = arith.constant 0 : i32
    %c0_i32_0 = arith.constant 0 : i32
    %c0_i32_1 = arith.constant 0 : i32
    return %c0_i32, %c0_i32_0 : i32, i32
  }
  func.func @transform_2(%arg0: i32) -> (i32, i32) {
    %c0_i32 = arith.constant 0 : i32
    %c0_i32_0 = arith.constant 0 : i32
    %c0_i32_1 = arith.constant 0 : i32
    return %c0_i32, %c0_i32_0 : i32, i32
  }
  func.func @transform_3(%arg0: i32) -> (i32, i32) {
    %c0_i32 = arith.constant 0 : i32
    %c0_i32_0 = arith.constant 0 : i32
    %c0_i32_1 = arith.constant 0 : i32
    return %c0_i32, %c0_i32_0 : i32, i32
  }
  func.func @transform_4(%arg0: i32) -> (i32, i32) {
    %c0_i32 = arith.constant 0 : i32
    %c0_i32_0 = arith.constant 0 : i32
    %c0_i32_1 = arith.constant 0 : i32
    return %c0_i32, %c0_i32_0 : i32, i32
  }
  func.func @transform_5(%arg0: i32) -> (i32, i32) {
    %c0_i32 = arith.constant 0 : i32
    %c0_i32_0 = arith.constant 0 : i32
    %c0_i32_1 = arith.constant 0 : i32
    return %c0_i32, %c0_i32_0 : i32, i32
  }
  func.func @transform_6(%arg0: i32) -> (i32, i32) {
    %c0_i32 = arith.constant 0 : i32
    %c0_i32_0 = arith.constant 0 : i32
    return %arg0, %c0_i32 : i32, i32
  }
}

module attributes {stable_mosaic.version = 11 : i64} {
  func.func @attention_head_kernel(%arg0: memref<8x64xf32, #tpu.memory_space<vmem>>, %arg1: memref<64x192xbf16, #tpu.memory_space<vmem>>, %arg2: memref<8x512xf32, #tpu.memory_space<vmem>>, %arg3: memref<8x1xf32, #tpu.memory_space<vmem>>) attributes {dimension_semantics = [], scalar_prefetch = 0 : i64, scratch_operands = 0 : i64, tpu.core_type = #tpu.core_type<tc>} {
    %c0 = arith.constant 0 : index
    %c0_0 = arith.constant 0 : index
    %0 = vector.load %arg0[%c0, %c0_0] : memref<8x64xf32, #tpu.memory_space<vmem>>, vector<8x64xf32>
    %1 = arith.truncf %0 : vector<8x64xf32> to vector<8x64xbf16>
    %c0_1 = arith.constant 0 : index
    %c0_2 = arith.constant 0 : index
    %2 = vector.load %arg1[%c0_1, %c0_2] : memref<64x192xbf16, #tpu.memory_space<vmem>>, vector<64x192xbf16>
    %cst = arith.constant dense<0.000000e+00> : vector<8x192xf32>
    %3 = tpu.matmul %1, %2, %cst {dimension_numbers = #tpu.dot_dimension_numbers<[1], [0], [0], [1], [0, 0, 1, 1], [], []>} : vector<8x64xbf16>, vector<64x192xbf16>, vector<8x192xf32> -> vector<8x192xf32>
    %c4 = arith.constant 4 : index
    %c0_3 = arith.constant 0 : index
    %4 = vector.load %arg2[%c4, %c0_3] : memref<8x512xf32, #tpu.memory_space<vmem>>, vector<1x192xf32>
    %5 = vector.broadcast %4 : vector<1x192xf32> to vector<8x192xf32>
    %6 = arith.addf %3, %5 : vector<8x192xf32>
    %7 = vector.extract_strided_slice %6 {offsets = [0, 0], sizes = [8, 64], strides = [1, 1]} : vector<8x192xf32> to vector<8x64xf32>
    %8 = arith.truncf %7 : vector<8x64xf32> to vector<8x64xbf16>
    %9 = vector.extract_strided_slice %6 {offsets = [0, 64], sizes = [8, 64], strides = [1, 1]} : vector<8x192xf32> to vector<8x64xf32>
    %10 = arith.truncf %9 : vector<8x64xf32> to vector<8x64xbf16>
    %11 = vector.extract_strided_slice %6 {offsets = [0, 128], sizes = [8, 64], strides = [1, 1]} : vector<8x192xf32> to vector<8x64xf32>
    %12 = arith.truncf %11 : vector<8x64xf32> to vector<8x64xbf16>
    %13 = tpu.transpose %10, [1, 0] : vector<8x64xbf16> -> vector<64x8xbf16>
    %cst_4 = arith.constant dense<0.000000e+00> : vector<8x8xf32>
    %14 = tpu.matmul %8, %13, %cst_4 {dimension_numbers = #tpu.dot_dimension_numbers<[1], [0], [0], [1], [0, 0, 1, 1], [], []>} : vector<8x64xbf16>, vector<64x8xbf16>, vector<8x8xf32> -> vector<8x8xf32>
    %cst_5 = arith.constant 1.250000e-01 : f32
    %15 = vector.broadcast %cst_5 : f32 to vector<8x8xf32>
    %16 = arith.mulf %14, %15 : vector<8x8xf32>
    %cst_6 = arith.constant dense<0xFF800000> : vector<8xf32>
    %17 = vector.multi_reduction <maximumf>, %16, %cst_6 [1] : vector<8x8xf32> to vector<8xf32>
    %18 = vector.shape_cast %17 : vector<8xf32> to vector<8x1xf32>
    %19 = vector.broadcast %18 : vector<8x1xf32> to vector<8x8xf32>
    %20 = arith.subf %16, %19 : vector<8x8xf32>
    %21 = math.exp %20 : vector<8x8xf32>
    %cst_7 = arith.constant dense<0.000000e+00> : vector<8xf32>
    %22 = vector.multi_reduction <add>, %21, %cst_7 [1] : vector<8x8xf32> to vector<8xf32>
    %23 = vector.shape_cast %22 : vector<8xf32> to vector<8x1xf32>
    %24 = tpu.reciprocal %23 {approx = true} : vector<8x1xf32> -> vector<8x1xf32>
    %25 = vector.broadcast %24 : vector<8x1xf32> to vector<8x8xf32>
    %26 = arith.mulf %21, %25 : vector<8x8xf32>
    %27 = arith.truncf %26 : vector<8x8xf32> to vector<8x8xbf16>
    %cst_8 = arith.constant dense<0.000000e+00> : vector<8x64xf32>
    %28 = tpu.matmul %27, %12, %cst_8 {dimension_numbers = #tpu.dot_dimension_numbers<[1], [0], [0], [1], [0, 0, 1, 1], [], []>} : vector<8x8xbf16>, vector<8x64xbf16>, vector<8x64xf32> -> vector<8x64xf32>
    %c5 = arith.constant 5 : index
    %c0_9 = arith.constant 0 : index
    %29 = vector.load %arg2[%c5, %c0_9] : memref<8x512xf32, #tpu.memory_space<vmem>>, vector<1x64xf32>
    %c6 = arith.constant 6 : index
    %c0_10 = arith.constant 0 : index
    %30 = vector.load %arg2[%c6, %c0_10] : memref<8x512xf32, #tpu.memory_space<vmem>>, vector<1x1xf32>
    %31 = vector.broadcast %29 : vector<1x64xf32> to vector<8x64xf32>
    %32 = arith.mulf %28, %31 : vector<8x64xf32>
    %cst_11 = arith.constant dense<0.000000e+00> : vector<8xf32>
    %33 = vector.multi_reduction <add>, %32, %cst_11 [1] : vector<8x64xf32> to vector<8xf32>
    %34 = vector.shape_cast %33 : vector<8xf32> to vector<8x1xf32>
    %35 = vector.broadcast %30 : vector<1x1xf32> to vector<8x1xf32>
    %36 = arith.addf %34, %35 : vector<8x1xf32>
    %37 = arith.negf %36 : vector<8x1xf32>
    %38 = math.exp %37 : vector<8x1xf32>
    %cst_12 = arith.constant 1.000000e+00 : f32
    %39 = vector.broadcast %cst_12 : f32 to vector<8x1xf32>
    %40 = arith.addf %39, %38 : vector<8x1xf32>
    %41 = arith.divf %39, %40 : vector<8x1xf32>
    %c0_13 = arith.constant 0 : index
    %c0_14 = arith.constant 0 : index
    %42 = vector.load %arg3[%c0_13, %c0_14] : memref<8x1xf32, #tpu.memory_space<vmem>>, vector<8x1xf32>
    tpu.vector_store %arg3[%c0_13, %c0_14], %41 {strides = array<i32>} : memref<8x1xf32, #tpu.memory_space<vmem>>, vector<8x1xf32>,
    return
  }
}

</mosaic_0001>

<bundles_post_ra>
// kernel: mlp_forward.3
= control target key start
LH: loop header
LB: loop body
LE: loop exit
PB: predicated region body
PF: predicated region fallthrough
CT: control target
= control target key end

     0   :  { %v307_v1 = vmov 0   ;;  %vm78_vm0 = vcmask 523264   ;;  %v28_v11 = vlaneseq  ;;  %v308_v13 = vmov 0.0   ;;  %s379_s1 = inlined_call_operand.vmem [shape: bf16[64,192], index: 1, kind: input, shape index: {}]   ;;  %s380_s0 = inlined_call_operand.vmem [shape: f32[8,64], index: 0, kind: input, shape index: {}]   ;;  %s381_s2 = inlined_call_operand.vmem [shape: f32[8,512], index: 2, kind: input, shape index: {}]   ;;  %s382_s3 = inlined_call_operand.vmem [shape: f32[8,1], index: 3, kind: output, shape index: {}]  }
   0x1   :  { %v287_v0 = vld [vmem:[%s379_s1 + $0x4] ss:$8 sps:$4 sm:$0xff]   ;;  %114 = vmatprep.mubr.bf16.mxu0 %v307_v1  ;;  %v289_v2 = vld [vmem:[%s379_s1] ss:$8 sps:$4 sm:$0xff]   ;;  %v290_v3 = vld [vmem:[%s379_s1 + $0x14] ss:$8 sps:$4 sm:$0xff]   ;;  %271 = vmatprep.subr.bf16.mxu1 %v308_v13 }
   0x2   :  { %82 = vmatprep.subr.bf16.mxu0 %v287_v0  ;;  %v292_v4 = vld [vmem:[%s379_s1 + $0x10] ss:$8 sps:$4 sm:$0xff]   ;;  %v293_v5 = vld [vmem:[%s379_s1 + $0x24] ss:$8 sps:$4 sm:$0xff]   ;;  %v295_v6 = vld [vmem:[%s379_s1 + $0x20] ss:$8 sps:$4 sm:$0xff]  }
   0x3   :  { %83 = vmatpush1.bf16.msra.mxu0 %v289_v2  ;;  %v296_v7 = vld [vmem:[%s379_s1 + $0x34] ss:$8 sps:$4 sm:$0xff]   ;;  %v298_v8 = vld [vmem:[%s379_s1 + $0x30] ss:$8 sps:$4 sm:$0xff]   ;;  %v15_v9 = vld [vmem:[%s380_s0] sm:$0xff]  ;;  %v29_v12 = vshrl.u32 %v28_v11, 7 }
   0x4   :  { %84 = vmatprep.subr.bf16.mxu0 %v290_v3  ;;  %v16_v10 = vpack.c.bf16 %v15_v9, %v15_v9  ;;  %v254_v15 = vld [vmem:[%s381_s2 + $0x4] ss:$8 sm:$0x3]  ;;  %vm309_vm1 = vmmov 0   ;;  %s310_s0 = smov 64   ;;  %vm191_vm2 = vcmask 1043456  }
   0x5   :  { %v30_v14 = vsub.s32 0, %v29_v12  ;;  %273 = vmatprep.mubr.msk.bf16.mxu1 %vm309_vm1, %v308_v13  ;;  %v34_v23 = vsub.s32 1, %v29_v12  ;;  %vm175_vm3 = vcmask 64512   ;;  %v235_v45 = vld [vmem:[%s381_s2 + $0x5] ss:$0 sm:$0xff]  ;;  %vm248_vm4 = vcmask 7168  }
   0x6   :  { %v236_v52 = vld [vmem:[%s381_s2 + $0x6] ss:$0 sm:$0xff] }
   0x7   :  { %85 = vmatpush1.bf16.msra.mxu0 %v292_v4  ;;  %v31_v16 = vrot.slane %v254_v15, %v30_v14  ;;  %v35_v24 = vrot.slane %v254_v15, %v34_v23 }
   0x8   :  { %86 = vmatprep.subr.bf16.mxu0 %v293_v5 }
   0xb   :  { %87 = vmatpush1.bf16.msra.mxu0 %v295_v6 }
   0xc   :  { %88 = vmatprep.subr.bf16.mxu0 %v296_v7 }
   0xf   :  { %89 = vmatpush1.bf16.msra.mxu0 %v298_v8 }
  0x12   :  { %263 = vmatmul.mubr.msk.bf16.vlgmr.msra.gmra.mrb[0].mxu0 %vm78_vm0, %v16_v10 }
  0xe5   :  { %v116_v17 = vpop.f32.mrb[0].mxu0 }
  0xe6   :  { %v117_v18 = vadd.f32 %v116_v17, %v31_v16  ;;  %v118_v19 = vpop.f32.mrb[1].mxu0 }
  0xe7   :  { %v120_v20 = vpop.f32.mrb[2].mxu0  ;;  %v119_v26 = vadd.f32 %v118_v19, %v35_v24 }
  0xe8   :  { %v123_v21 = vpack.c.bf16 %v117_v18, %v117_v18  ;;  %v121_v22 = vpop.f32.mrb[3].mxu0 }
  0xe9   :  { %v124_v28 = vpack.c.bf16 %v119_v26, %v119_v26 }
  0xea   :  { %126 = vrot.lane.b32.xlu0 %v123_v21, %s310_s0 }
  0xeb   :  { %v193_v29 = vsel %vm191_vm2, %v124_v28, 0 }
 0x15c   :  { %v127_v25 = vpop.permute.xlu0 %126 }
 0x15d   :  { %v132_v27 = vsel %vm78_vm0, %v127_v25, 0 }
 0x15e   :  { %272 = vmatpush3.bf16.xpose.msra.mxu1 %v132_v27 }
 0x15f   :  { %277 = vmatprep.subr.bf16.mxu1 %v308_v13 }
 0x165   :  { %274 = vmatmul.mubr.msk.bf16.vlgmr.msra.gmra.mrb[0].mxu1 %vm78_vm0, %v123_v21 }
 0x166   :  { %278 = vmatpush3.bf16.msra.mxu1 %v193_v29  ;;  %279 = vmatprep.mubr.msk.bf16.mxu1 %vm309_vm1, %v308_v13 }
 0x238   :  { %v168_v30 = vpop.f32.mrb[0].mxu1 }
 0x239   :  { %v174_v31 = vmul.f32 0.125, %v168_v30  ;;  %v275_v32 = vpop.f32.mrb[1].mxu1 }
 0x23a   :  { %v171_v33 = vpop.f32.mrb[2].mxu1 }
 0x23b   :  { %v276_v34 = vpop.f32.mrb[3].mxu1  ;;  %v176_v35 = vsel %vm175_vm3, %v174_v31, -inf }
 0x23c   :  { %177 = vmax.xlane.f32.xlu0 %v176_v35 }
 0x2c9   :  { %v178_v36 = vpop.xlane.xlu0 %177 }
 0x2ca   :  { %v179_v37 = vsub.f32 %v174_v31, %v178_v36 }
 0x2cc   :  { %v180_v38 = vmul.f32 1.442695, %v179_v37 }
 0x2ce   :  { %299 = vpow2.f32 %v180_v38 }
 0x2d8   :  { %v300_v39 = vpop.eup %299 }
 0x2d9   :  { %v182_v40 = vsel %vm175_vm3, %v300_v39, 0.0 }
 0x2da   :  { %183 = vadd.xlane.f32.xlu1 %v182_v40 }
 0x367   :  { %v184_v41 = vpop.xlane.xlu1 %183 }
 0x368   :  { %301 = vrcp.f32 %v184_v41 }
 0x372   :  { %v302_v42 = vpop.eup %301 }
 0x373   :  { %v186_v43 = vmul.f32 %v302_v42, %v300_v39 }
 0x375   :  { %v187_v44 = vpack.c.bf16 %v186_v43, %v186_v43 }
 0x377   :  { %280 = vmatmul.mubr.msk.bf16.vlgmr.msra.gmra.mrb[4].mxu1 %vm175_vm3, %v187_v44 }
 0x44a   :  { %v229_v46 = vpop.f32.mrb[4].mxu1 }
 0x44b   :  { %v237_v47 = vmul.f32 %v235_v45, %v229_v46  ;;  %v281_v48 = vpop.f32.mrb[5].mxu1 }
 0x44c   :  { %v232_v49 = vpop.f32.mrb[6].mxu1 }
 0x44d   :  { %v282_v50 = vpop.f32.mrb[7].mxu1  ;;  %v238_v51 = vsel %vm78_vm0, %v237_v47, 0.0 }
 0x44e   :  { %239 = vadd.xlane.f32.xlu1 %v238_v51 }
 0x4db   :  { %v240_v53 = vpop.xlane.xlu1 %239 }
 0x4dc   :  { %v241_v54 = vadd.f32 %v240_v53, %v236_v52 }
 0x4de   :  { %v266_v55 = vmul.f32 -1.442695, %v241_v54 }
 0x4e0   :  { %303 = vpow2.f32 %v266_v55 }
 0x4ea   :  { %v304_v56 = vpop.eup %303 }
 0x4eb   :  { %v245_v57 = vadd.f32 1.0, %v304_v56 }
 0x4ed   :  { %305 = vrcp.f32 %v245_v57 }
 0x4f7   :  { %v306_v58 = vpop.eup %305 }
 0x4f8   :  { %249 = vst.msk [vmem:[%s382_s3] sm:$0xff] %vm248_vm4, %v306_v58 }

// kernel: mlp_forward.2
= control target key start
LH: loop header
LB: loop body
LE: loop exit
PB: predicated region body
PF: predicated region fallthrough
CT: control target
= control target key end

     0   :  { %11 = vsyncpa [#allocation3], 0  ;;  %s3663_s0 = inlined_call_operand.vmem [shape: f32[8,896], index: 0, kind: input, shape index: {}]   ;;  %s3664_s1 = inlined_call_operand.hbm [shape: bf16[896,512], index: 1, kind: input, shape index: {}]   ;;  %s3665_s2 = inlined_call_operand.hbm [shape: bf16[512,256], index: 2, kind: input, shape index: {}]   ;;  %s3666_s3 = inlined_call_operand.vmem [shape: bf16[256,128], index: 3, kind: input, shape index: {}]   ;;  %s3667_s4 = inlined_call_operand.vmem [shape: bf16[128,64], index: 4, kind: input, shape index: {}]   ;;  %s3668_s5 = inlined_call_operand.vmem [shape: f32[8,512], index: 5, kind: input, shape index: {}]   ;;  %s3669_s6 = inlined_call_operand.vmem [shape: f32[8,64], index: 6, kind: output, shape index: {}]  }
   0x1   :  { %12 = vsyncpa [#allocation5], 0  ;;  %s3445_s21 = smov [#allocation2]   ;;  %s3397_s25 = scalar_lea.hbm %s3664_s1, 28672 }
   0x2   :  { %s20_s22 = sshll.u32 %s3445_s21, 4  ;;  %p3398_p0 = scmp.ne.s32.totalorder %s3664_s1, %s3397_s25  ;;  %s21_s22 = int_to_ptr.vmem [resolvable:$true] %s20_s22 }
   0x3   :  { %p3401_p1 = scmp.lt.u32.totalorder %s3397_s25, %s3664_s1 }
   0x5   :  { %p3403_p2 = pnand %p3401_p1, %p3398_p0 }
   0x7   :  { %3406 = shalt.err (!%p3403_p2)
}
   0x8   :  { %s3407_s30 = scalar_lea.vmem %s21_s22, 28672  ;;  %p3412_p4 = scmp.lt.s32.totalorder %s21_s22, %s21_s22 }
   0x9   :  { %p3408_p3 = scmp.ne.s32.totalorder %s21_s22, %s3407_s30  ;;  %p3413_p5 = scmp.lt.s32.totalorder %s3407_s30, %s3407_s30 }
   0xb   :  { %p3414_p6 = por %p3413_p5, %p3412_p4 }
   0xd   :  { %p3415_p7 = pnand %p3414_p6, %p3408_p3 }
   0xf   :  { %3418 = shalt.err (!%p3415_p7)
}
  0x10   :  { %s3446_s7 = smov 256   ;;  %s3447_s8 = smov 16  }
  0x11   :  { %26 = dma.hbm_to_vmem [thread:$0]  %s3664_s1, 28672, %s21_s22, [#allocation3], %s3446_s7, %s3446_s7, %s3447_s8  }
  0x12   :  { %s3448_s11 = smov [#allocation4]   ;;  %s3419_s15 = scalar_lea.hbm %s3665_s2, 8192 }
  0x13   :  { %s32_s12 = sshll.u32 %s3448_s11, 4  ;;  %p3420_p8 = scmp.ne.s32.totalorder %s3665_s2, %s3419_s15  ;;  %s33_s12 = int_to_ptr.vmem [resolvable:$true] %s32_s12 }
  0x14   :  { %p3423_p9 = scmp.lt.u32.totalorder %s3419_s15, %s3665_s2 }
  0x16   :  { %p3425_p10 = pnand %p3423_p9, %p3420_p8 }
  0x18   :  { %3428 = shalt.err (!%p3425_p10)
}
  0x19   :  { %s3429_s20 = scalar_lea.vmem %s33_s12, 8192  ;;  %p3434_p12 = scmp.lt.s32.totalorder %s33_s12, %s33_s12 }
  0x1a   :  { %p3430_p11 = scmp.ne.s32.totalorder %s33_s12, %s3429_s20  ;;  %p3435_p13 = scmp.lt.s32.totalorder %s3429_s20, %s3429_s20 }
  0x1c   :  { %p3436_p0 = por %p3435_p13, %p3434_p12 }
  0x1e   :  { %p3437_p1 = pnand %p3436_p0, %p3430_p11 }
  0x20   :  { %3440 = shalt.err (!%p3437_p1)
}
  0x21   :  { %s3449_s1 = smov 128   ;;  %s3450_s21 = smov 8  }
  0x22   :  { %38 = dma.hbm_to_vmem [thread:$0]  %s3665_s2, 8192, %s33_s12, [#allocation5], %s3449_s1, %s3449_s1, %s3450_s21  }
  0x23   :  { %3441 = dma.done.wait [#allocation3], 28672  }
  0x24   :  { %3442 = vsyncadd [#allocation3], 4294938624 }
  0x25   :  { %3443 = dma.done.wait [#allocation5], 8192  }
  0x26   :  { %3444 = vsyncadd [#allocation5], 4294959104  ;;  %v3451_v0 = vmov 0   ;;  %v2941_v1 = vld [vmem:[#allocation2 + $0x4] ss:$16 sps:$4 sm:$0xff]   ;;  %v53_v49 = vld [vmem:[%s3663_s0 + $0x8] sm:$0xff] }
  0x27   :  { %1587 = vmatprep.mubr.bf16.mxu1 %v3451_v0  ;;  %v2943_v2 = vld [vmem:[#allocation2 + $0x604] ss:$16 sps:$4 sm:$0xff]   ;;  %1432 = vmatprep.subr.bf16.mxu0 %v2941_v1  ;;  %v2945_v3 = vld [vmem:[#allocation2] ss:$16 sps:$4 sm:$0xff]   ;;  %v2993_v35 = vld [vmem:[#allocation2 + $0xc] ss:$16 sps:$4 sm:$0xff]   ;;  %v61_v52 = vpack.c.bf16 %v53_v49, %v53_v49 }
  0x28   :  { %v2946_v4 = vld [vmem:[#allocation2 + $0x600] ss:$16 sps:$4 sm:$0xff]   ;;  %1555 = vmatprep.subr.bf16.mxu1 %v2943_v2  ;;  %v2947_v5 = vld [vmem:[#allocation2 + $0x24] ss:$16 sps:$4 sm:$0xff]   ;;  %1433 = vmatpush1.bf16.msra.mxu0 %v2945_v3  ;;  %v2991_v37 = vld [vmem:[#allocation2 + $0x8] ss:$16 sps:$4 sm:$0xff]  }
  0x29   :  { %1556 = vmatpush1.bf16.msra.mxu1 %v2946_v4  ;;  %v2949_v6 = vld [vmem:[#allocation2 + $0x624] ss:$16 sps:$4 sm:$0xff]   ;;  %v2951_v7 = vld [vmem:[#allocation2 + $0x20] ss:$16 sps:$4 sm:$0xff]   ;;  %1434 = vmatprep.subr.bf16.mxu0 %v2947_v5  ;;  %v2999_v40 = vld [vmem:[#allocation2 + $0x2c] ss:$16 sps:$4 sm:$0xff]  }
  0x2a   :  { %v2952_v8 = vld [vmem:[#allocation2 + $0x620] ss:$16 sps:$4 sm:$0xff]   ;;  %1557 = vmatprep.subr.bf16.mxu1 %v2949_v6  ;;  %v2953_v9 = vld [vmem:[#allocation2 + $0x44] ss:$16 sps:$4 sm:$0xff]   ;;  %v2997_v41 = vld [vmem:[#allocation2 + $0x28] ss:$16 sps:$4 sm:$0xff]   ;;  %1464 = vmatprep.mubr.bf16.mxu0 %v61_v52 }
  0x2b   :  { %v2955_v10 = vld [vmem:[#allocation2 + $0x644] ss:$16 sps:$4 sm:$0xff]   ;;  %v2957_v11 = vld [vmem:[#allocation2 + $0x40] ss:$16 sps:$4 sm:$0xff]   ;;  %v3005_v44 = vld [vmem:[#allocation2 + $0x4c] ss:$16 sps:$4 sm:$0xff]  }
  0x2c   :  { %v2958_v12 = vld [vmem:[#allocation2 + $0x640] ss:$16 sps:$4 sm:$0xff]   ;;  %1435 = vmatpush1.bf16.msra.mxu0 %v2951_v7  ;;  %v2959_v13 = vld [vmem:[#allocation2 + $0x64] ss:$16 sps:$4 sm:$0xff]   ;;  %v3003_v45 = vld [vmem:[#allocation2 + $0x48] ss:$16 sps:$4 sm:$0xff]  }
  0x2d   :  { %1558 = vmatpush1.bf16.msra.mxu1 %v2952_v8  ;;  %1436 = vmatprep.subr.bf16.mxu0 %v2953_v9  ;;  %v2961_v14 = vld [vmem:[#allocation2 + $0x664] ss:$16 sps:$4 sm:$0xff]   ;;  %v2963_v15 = vld [vmem:[#allocation2 + $0x60] ss:$16 sps:$4 sm:$0xff]   ;;  %v3011_v48 = vld [vmem:[#allocation2 + $0x6c] ss:$16 sps:$4 sm:$0xff]  }
  0x2e   :  { %1559 = vmatprep.subr.bf16.mxu1 %v2955_v10  ;;  %v2964_v16 = vld [vmem:[#allocation2 + $0x660] ss:$16 sps:$4 sm:$0xff]   ;;  %v2965_v17 = vld [vmem:[#allocation2 + $0x84] ss:$16 sps:$4 sm:$0xff]   ;;  %v3009_v50 = vld [vmem:[#allocation2 + $0x68] ss:$16 sps:$4 sm:$0xff]  }
  0x2f   :  { %v2967_v18 = vld [vmem:[#allocation2 + $0x684] ss:$16 sps:$4 sm:$0xff]   ;;  %v2969_v19 = vld [vmem:[#allocation2 + $0x80] ss:$16 sps:$4 sm:$0xff]   ;;  %v3017_v54 = vld [vmem:[#allocation2 + $0x8c] ss:$16 sps:$4 sm:$0xff]  }
  0x30   :  { %1437 = vmatpush1.bf16.msra.mxu0 %v2957_v11  ;;  %v2970_v20 = vld [vmem:[#allocation2 + $0x680] ss:$16 sps:$4 sm:$0xff]   ;;  %v2971_v21 = vld [vmem:[#allocation2 + $0xa4] ss:$16 sps:$4 sm:$0xff]   ;;  %v3015_v55 = vld [vmem:[#allocation2 + $0x88] ss:$16 sps:$4 sm:$0xff]  }
  0x31   :  { %1560 = vmatpush1.bf16.msra.mxu1 %v2958_v12  ;;  %1438 = vmatprep.subr.bf16.mxu0 %v2959_v13  ;;  %v2973_v22 = vld [vmem:[#allocation2 + $0x6a4] ss:$16 sps:$4 sm:$0xff]   ;;  %v2975_v23 = vld [vmem:[#allocation2 + $0xa0] ss:$16 sps:$4 sm:$0xff]   ;;  %v3023_v58 = vld [vmem:[#allocation2 + $0xac] ss:$16 sps:$4 sm:$0xff]  }
  0x32   :  { %1561 = vmatprep.subr.bf16.mxu1 %v2961_v14  ;;  %v2976_v24 = vld [vmem:[#allocation2 + $0x6a0] ss:$16 sps:$4 sm:$0xff]   ;;  %v2977_v25 = vld [vmem:[#allocation2 + $0xc4] ss:$16 sps:$4 sm:$0xff]   ;;  %v3021_v59 = vld [vmem:[#allocation2 + $0xa8] ss:$16 sps:$4 sm:$0xff]  }
  0x33   :  { %v2979_v26 = vld [vmem:[#allocation2 + $0x6c4] ss:$16 sps:$4 sm:$0xff]   ;;  %v2981_v27 = vld [vmem:[#allocation2 + $0xc0] ss:$16 sps:$4 sm:$0xff]   ;;  %v3029_v62 = vld [vmem:[#allocation2 + $0xcc] ss:$16 sps:$4 sm:$0xff]  }
  0x34   :  { %1439 = vmatpush1.bf16.msra.mxu0 %v2963_v15  ;;  %v2982_v28 = vld [vmem:[#allocation2 + $0x6c0] ss:$16 sps:$4 sm:$0xff]   ;;  %v2983_v29 = vld [vmem:[#allocation2 + $0xe4] ss:$16 sps:$4 sm:$0xff]   ;;  %v3027_v63 = vld [vmem:[#allocation2 + $0xc8] ss:$16 sps:$4 sm:$0xff]  }
  0x35   :  { %1562 = vmatpush1.bf16.msra.mxu1 %v2964_v16  ;;  %1440 = vmatprep.subr.bf16.mxu0 %v2965_v17  ;;  %v2985_v30 = vld [vmem:[#allocation2 + $0x6e4] ss:$16 sps:$4 sm:$0xff]   ;;  %v2987_v31 = vld [vmem:[#allocation2 + $0xe0] ss:$16 sps:$4 sm:$0xff]   ;;  %v3035_v3 = vld [vmem:[#allocation2 + $0xec] ss:$16 sps:$4 sm:$0xff]  }
  0x36   :  { %1563 = vmatprep.subr.bf16.mxu1 %v2967_v18  ;;  %v2988_v32 = vld [vmem:[#allocation2 + $0x6e0] ss:$16 sps:$4 sm:$0xff]   ;;  %v2989_v34 = vld [vmem:[#allocation2 + $0x104] ss:$16 sps:$4 sm:$0xff]   ;;  %v3033_v4 = vld [vmem:[#allocation2 + $0xe8] ss:$16 sps:$4 sm:$0xff]  }
  0x37   :  { %v58_v33 = vld [vmem:[%s3663_s0 + $0x30] sm:$0xff]  ;;  %v52_v7 = vld [vmem:[%s3663_s0] sm:$0xff]  ;;  %v3042_v8 = vld [vmem:[#allocation2 + $0x10c] ss:$16 sps:$4 sm:$0xff]   ;;  %vm3453_vm0 = vmmov 0   ;;  %vm2528_vm1 = vcmask 523264  }
  0x38   :  { %1441 = vmatpush1.bf16.msra.mxu0 %v2969_v19  ;;  %v3517_v36 = vpack.c.bf16 %v58_v33, %v58_v33  ;;  %v2994_v38 = vld [vmem:[#allocation2 + $0x100] ss:$16 sps:$4 sm:$0xff]   ;;  %v2995_v39 = vld [vmem:[#allocation2 + $0x124] ss:$16 sps:$4 sm:$0xff]   ;;  %v3526_v10 = vpack.c.bf16 %v52_v7, %v52_v7  ;;  %v3040_v11 = vld [vmem:[#allocation2 + $0x108] ss:$16 sps:$4 sm:$0xff]  }
  0x39   :  { %1564 = vmatpush1.bf16.msra.mxu1 %v2970_v20  ;;  %1442 = vmatprep.subr.bf16.mxu0 %v2971_v21  ;;  %v3000_v42 = vld [vmem:[#allocation2 + $0x120] ss:$16 sps:$4 sm:$0xff]   ;;  %v3001_v43 = vld [vmem:[#allocation2 + $0x144] ss:$16 sps:$4 sm:$0xff]   ;;  %v3048_v13 = vld [vmem:[#allocation2 + $0x12c] ss:$16 sps:$4 sm:$0xff]  }
  0x3a   :  { %1565 = vmatprep.subr.bf16.mxu1 %v2973_v22  ;;  %v3006_v46 = vld [vmem:[#allocation2 + $0x140] ss:$16 sps:$4 sm:$0xff]   ;;  %v3007_v47 = vld [vmem:[#allocation2 + $0x164] ss:$16 sps:$4 sm:$0xff]   ;;  %v3046_v15 = vld [vmem:[#allocation2 + $0x128] ss:$16 sps:$4 sm:$0xff]  }
  0x3b   :  { %v3012_v51 = vld [vmem:[#allocation2 + $0x160] ss:$16 sps:$4 sm:$0xff]   ;;  %v3013_v53 = vld [vmem:[#allocation2 + $0x184] ss:$16 sps:$4 sm:$0xff]   ;;  %v3054_v17 = vld [vmem:[#allocation2 + $0x14c] ss:$16 sps:$4 sm:$0xff]  }
  0x3c   :  { %1443 = vmatpush1.bf16.msra.mxu0 %v2975_v23  ;;  %v3018_v56 = vld [vmem:[#allocation2 + $0x180] ss:$16 sps:$4 sm:$0xff]   ;;  %v3019_v57 = vld [vmem:[#allocation2 + $0x1a4] ss:$16 sps:$4 sm:$0xff]   ;;  %v3052_v19 = vld [vmem:[#allocation2 + $0x148] ss:$16 sps:$4 sm:$0xff]  }
  0x3d   :  { %1566 = vmatpush1.bf16.msra.mxu1 %v2976_v24  ;;  %1444 = vmatprep.subr.bf16.mxu0 %v2977_v25  ;;  %v3024_v60 = vld [vmem:[#allocation2 + $0x1a0] ss:$16 sps:$4 sm:$0xff]   ;;  %v3025_v61 = vld [vmem:[#allocation2 + $0x1c4] ss:$16 sps:$4 sm:$0xff]   ;;  %v3060_v21 = vld [vmem:[#allocation2 + $0x16c] ss:$16 sps:$4 sm:$0xff]  }
  0x3e   :  { %1567 = vmatprep.subr.bf16.mxu1 %v2979_v26  ;;  %v3030_v1 = vld [vmem:[#allocation2 + $0x1c0] ss:$16 sps:$4 sm:$0xff]   ;;  %v3031_v2 = vld [vmem:[#allocation2 + $0x1e4] ss:$16 sps:$4 sm:$0xff]   ;;  %v3058_v23 = vld [vmem:[#allocation2 + $0x168] ss:$16 sps:$4 sm:$0xff]  }
  0x3f   :  { %v3036_v5 = vld [vmem:[#allocation2 + $0x1e0] ss:$16 sps:$4 sm:$0xff]   ;;  %v3039_v6 = vld [vmem:[#allocation2 + $0x204] ss:$16 sps:$4 sm:$0xff]   ;;  %v3066_v25 = vld [vmem:[#allocation2 + $0x18c] ss:$16 sps:$4 sm:$0xff]  }
  0x40   :  { %1445 = vmatpush1.bf16.msra.mxu0 %v2981_v27  ;;  %v3037_v9 = vld [vmem:[#allocation2 + $0x200] ss:$16 sps:$4 sm:$0xff]   ;;  %v3045_v12 = vld [vmem:[#allocation2 + $0x224] ss:$16 sps:$4 sm:$0xff]   ;;  %v3064_v27 = vld [vmem:[#allocation2 + $0x188] ss:$16 sps:$4 sm:$0xff]  }
  0x41   :  { %1568 = vmatpush1.bf16.msra.mxu1 %v2982_v28  ;;  %1446 = vmatprep.subr.bf16.mxu0 %v2983_v29  ;;  %v3043_v14 = vld [vmem:[#allocation2 + $0x220] ss:$16 sps:$4 sm:$0xff]   ;;  %v3051_v16 = vld [vmem:[#allocation2 + $0x244] ss:$16 sps:$4 sm:$0xff]   ;;  %v3072_v29 = vld [vmem:[#allocation2 + $0x1ac] ss:$16 sps:$4 sm:$0xff]  }
  0x42   :  { %1569 = vmatprep.subr.bf16.mxu1 %v2985_v30  ;;  %v3049_v18 = vld [vmem:[#allocation2 + $0x240] ss:$16 sps:$4 sm:$0xff]   ;;  %v3057_v20 = vld [vmem:[#allocation2 + $0x264] ss:$16 sps:$4 sm:$0xff]   ;;  %v3078_v33 = vld [vmem:[#allocation2 + $0x1cc] ss:$16 sps:$4 sm:$0xff]  }
  0x43   :  { %v3055_v22 = vld [vmem:[#allocation2 + $0x260] ss:$16 sps:$4 sm:$0xff]   ;;  %v3063_v24 = vld [vmem:[#allocation2 + $0x284] ss:$16 sps:$4 sm:$0xff]   ;;  %v3124_v7 = vld [vmem:[#allocation2 + $0x2c8] ss:$16 sps:$4 sm:$0xff]  }
  0x44   :  { %1447 = vmatpush1.bf16.msra.mxu0 %v2987_v31  ;;  %v3061_v26 = vld [vmem:[#allocation2 + $0x280] ss:$16 sps:$4 sm:$0xff]   ;;  %v3069_v28 = vld [vmem:[#allocation2 + $0x2a4] ss:$16 sps:$4 sm:$0xff]   ;;  %v3070_v31 = vld [vmem:[#allocation2 + $0x1a8] ss:$16 sps:$4 sm:$0xff]  }
  0x45   :  { %1570 = vmatpush1.bf16.msra.mxu1 %v2988_v32  ;;  %1448 = vmatprep.subr.bf16.mxu0 %v2989_v34  ;;  %v3067_v30 = vld [vmem:[#allocation2 + $0x2a0] ss:$16 sps:$4 sm:$0xff]   ;;  %v3075_v32 = vld [vmem:[#allocation2 + $0x2c4] ss:$16 sps:$4 sm:$0xff]   ;;  %v55_v34 = vld [vmem:[%s3663_s0 + $0x18] sm:$0xff] }
  0x46   :  { %1596 = vmatprep.subr.bf16.mxu1 %v2993_v35  ;;  %v3073_v35 = vld [vmem:[#allocation2 + $0x2c0] ss:$16 sps:$4 sm:$0xff]  }
  0x47   :  { %v3091_v49 = vld [vmem:[#allocation2 + $0x320] ss:$16 sps:$4 sm:$0xff]  }
  0x48   :  { %1588 = vmatmul.mubr.bf16.vlgmr.msra.gmra.mrb[0].mxu1 %v3517_v36  ;;  %1449 = vmatpush1.bf16.msra.mxu0 %v2994_v38  ;;  %v3076_v38 = vld [vmem:[#allocation2 + $0x1c8] ss:$16 sps:$4 sm:$0xff]  }
  0x49   :  { %1597 = vmatpush1.bf16.msra.mxu1 %v2991_v37  ;;  %1450 = vmatprep.subr.bf16.mxu0 %v2995_v39  ;;  %v63_v37 = vpack.c.bf16 %v55_v34, %v55_v34  ;;  %v3081_v39 = vld [vmem:[#allocation2 + $0x2e4] ss:$16 sps:$4 sm:$0xff]   ;;  %v3157_v34 = vld [vmem:[#allocation2 + $0x480] ss:$16 sps:$4 sm:$0xff]  }
  0x4a   :  { %1598 = vmatprep.subr.bf16.mxu1 %v2999_v40  ;;  %1628 = vmatprep.mubr.bf16.mxu1 %v61_v52  ;;  %v3084_v40 = vld [vmem:[#allocation2 + $0x1ec] ss:$16 sps:$4 sm:$0xff]  }
  0x4b   :  { %v3102_v52 = vld [vmem:[#allocation2 + $0x24c] ss:$16 sps:$4 sm:$0xff]  }
  0x4c   :  { %1451 = vmatpush1.bf16.msra.mxu0 %v3000_v42  ;;  %v3082_v42 = vld [vmem:[#allocation2 + $0x1e8] ss:$16 sps:$4 sm:$0xff]  }
  0x4d   :  { %1599 = vmatpush1.bf16.msra.mxu1 %v2997_v41  ;;  %1452 = vmatprep.subr.bf16.mxu0 %v3001_v43  ;;  %v3079_v41 = vld [vmem:[#allocation2 + $0x2e0] ss:$16 sps:$4 sm:$0xff]   ;;  %v3087_v43 = vld [vmem:[#allocation2 + $0x304] ss:$16 sps:$4 sm:$0xff]  }
  0x4e   :  { %1600 = vmatprep.subr.bf16.mxu1 %v3005_v44  ;;  %v3090_v44 = vld [vmem:[#allocation2 + $0x20c] ss:$16 sps:$4 sm:$0xff]  }
  0x50   :  { %1453 = vmatpush1.bf16.msra.mxu0 %v3006_v46  ;;  %v3088_v46 = vld [vmem:[#allocation2 + $0x208] ss:$16 sps:$4 sm:$0xff]  }
  0x51   :  { %1601 = vmatpush1.bf16.msra.mxu1 %v3003_v45  ;;  %1454 = vmatprep.subr.bf16.mxu0 %v3007_v47  ;;  %v3085_v45 = vld [vmem:[#allocation2 + $0x300] ss:$16 sps:$4 sm:$0xff]   ;;  %v3093_v47 = vld [vmem:[#allocation2 + $0x324] ss:$16 sps:$4 sm:$0xff]  }
  0x52   :  { %1602 = vmatprep.subr.bf16.mxu1 %v3011_v48  ;;  %v3096_v48 = vld [vmem:[#allocation2 + $0x22c] ss:$16 sps:$4 sm:$0xff]  }
  0x54   :  { %1455 = vmatpush1.bf16.msra.mxu0 %v3012_v51  ;;  %v3099_v51 = vld [vmem:[#allocation2 + $0x344] ss:$16 sps:$4 sm:$0xff]  }
  0x55   :  { %1603 = vmatpush1.bf16.msra.mxu1 %v3009_v50  ;;  %1456 = vmatprep.subr.bf16.mxu0 %v3013_v53  ;;  %v3094_v50 = vld [vmem:[#allocation2 + $0x228] ss:$16 sps:$4 sm:$0xff]   ;;  %v3097_v53 = vld [vmem:[#allocation2 + $0x340] ss:$16 sps:$4 sm:$0xff]  }
  0x56   :  { %1604 = vmatprep.subr.bf16.mxu1 %v3017_v54  ;;  %v3100_v54 = vld [vmem:[#allocation2 + $0x248] ss:$16 sps:$4 sm:$0xff]  }
  0x58   :  { %1457 = vmatpush1.bf16.msra.mxu0 %v3018_v56  ;;  %v3108_v56 = vld [vmem:[#allocation2 + $0x26c] ss:$16 sps:$4 sm:$0xff]  }
  0x59   :  { %1605 = vmatpush1.bf16.msra.mxu1 %v3015_v55  ;;  %1458 = vmatprep.subr.bf16.mxu0 %v3019_v57  ;;  %v3105_v55 = vld [vmem:[#allocation2 + $0x364] ss:$16 sps:$4 sm:$0xff]   ;;  %v3103_v57 = vld [vmem:[#allocation2 + $0x360] ss:$16 sps:$4 sm:$0xff]  }
  0x5a   :  { %1606 = vmatprep.subr.bf16.mxu1 %v3023_v58  ;;  %v3106_v58 = vld [vmem:[#allocation2 + $0x268] ss:$16 sps:$4 sm:$0xff]  }
  0x5c   :  { %1459 = vmatpush1.bf16.msra.mxu0 %v3024_v60  ;;  %v3114_v60 = vld [vmem:[#allocation2 + $0x28c] ss:$16 sps:$4 sm:$0xff]  }
  0x5d   :  { %1607 = vmatpush1.bf16.msra.mxu1 %v3021_v59  ;;  %1460 = vmatprep.subr.bf16.mxu0 %v3025_v61  ;;  %v3111_v59 = vld [vmem:[#allocation2 + $0x384] ss:$16 sps:$4 sm:$0xff]   ;;  %v3109_v61 = vld [vmem:[#allocation2 + $0x380] ss:$16 sps:$4 sm:$0xff]  }
  0x5e   :  { %1608 = vmatprep.subr.bf16.mxu1 %v3029_v62  ;;  %v3112_v62 = vld [vmem:[#allocation2 + $0x288] ss:$16 sps:$4 sm:$0xff]  }
  0x60   :  { %1461 = vmatpush1.bf16.msra.mxu0 %v3030_v1  ;;  %v3120_v1 = vld [vmem:[#allocation2 + $0x2ac] ss:$16 sps:$4 sm:$0xff]  }
  0x61   :  { %1609 = vmatpush1.bf16.msra.mxu1 %v3027_v63  ;;  %1462 = vmatprep.subr.bf16.mxu0 %v3031_v2  ;;  %v3117_v63 = vld [vmem:[#allocation2 + $0x3a4] ss:$16 sps:$4 sm:$0xff]   ;;  %v3115_v2 = vld [vmem:[#allocation2 + $0x3a0] ss:$16 sps:$4 sm:$0xff]  }
  0x62   :  { %1610 = vmatprep.subr.bf16.mxu1 %v3035_v3  ;;  %v3118_v3 = vld [vmem:[#allocation2 + $0x2a8] ss:$16 sps:$4 sm:$0xff]  }
  0x64   :  { %1463 = vmatpush1.bf16.msra.mxu0 %v3036_v5  ;;  %v3126_v5 = vld [vmem:[#allocation2 + $0x2cc] ss:$16 sps:$4 sm:$0xff]  }
  0x65   :  { %1611 = vmatpush1.bf16.msra.mxu1 %v3033_v4  ;;  %1473 = vmatprep.subr.bf16.mxu0 %v3039_v6  ;;  %v3123_v4 = vld [vmem:[#allocation2 + $0x3c4] ss:$16 sps:$4 sm:$0xff]   ;;  %v3121_v6 = vld [vmem:[#allocation2 + $0x3c0] ss:$16 sps:$4 sm:$0xff]  }
  0x66   :  { %1612 = vmatprep.subr.bf16.mxu1 %v3042_v8  ;;  %v3129_v8 = vld [vmem:[#allocation2 + $0x3e4] ss:$16 sps:$4 sm:$0xff]  }
  0x67   :  { %1465 = vmatmul.mubr.bf16.vlgmr.msra.gmra.mrb[0].mxu0 %v3526_v10 }
  0x68   :  { %1474 = vmatpush1.bf16.msra.mxu0 %v3037_v9  ;;  %1505 = vmatprep.mubr.bf16.mxu0 %v63_v37  ;;  %v3132_v9 = vld [vmem:[#allocation2 + $0x2ec] ss:$16 sps:$4 sm:$0xff]  }
  0x69   :  { %1613 = vmatpush1.bf16.msra.mxu1 %v3040_v11  ;;  %1475 = vmatprep.subr.bf16.mxu0 %v3045_v12  ;;  %v3130_v11 = vld [vmem:[#allocation2 + $0x2e8] ss:$16 sps:$4 sm:$0xff]   ;;  %v54_v12 = vld [vmem:[%s3663_s0 + $0x10] sm:$0xff] }
  0x6a   :  { %1614 = vmatprep.subr.bf16.mxu1 %v3048_v13  ;;  %v3135_v13 = vld [vmem:[#allocation2 + $0x404] ss:$16 sps:$4 sm:$0xff]  }
  0x6c   :  { %1476 = vmatpush1.bf16.msra.mxu0 %v3043_v14  ;;  %v3138_v14 = vld [vmem:[#allocation2 + $0x30c] ss:$16 sps:$4 sm:$0xff]  }
  0x6d   :  { %1615 = vmatpush1.bf16.msra.mxu1 %v3046_v15  ;;  %1477 = vmatprep.subr.bf16.mxu0 %v3051_v16  ;;  %v3133_v15 = vld [vmem:[#allocation2 + $0x400] ss:$16 sps:$4 sm:$0xff]   ;;  %v3536_v16 = vpack.c.bf16 %v54_v12, %v54_v12 }
  0x6e   :  { %1616 = vmatprep.subr.bf16.mxu1 %v3054_v17  ;;  %v3136_v17 = vld [vmem:[#allocation2 + $0x308] ss:$16 sps:$4 sm:$0xff]   ;;  %v3217_v12 = vld [vmem:[#allocation2 + $0x5c0] ss:$16 sps:$4 sm:$0xff]  }
  0x70   :  { %1478 = vmatpush1.bf16.msra.mxu0 %v3049_v18  ;;  %v3141_v18 = vld [vmem:[#allocation2 + $0x424] ss:$16 sps:$4 sm:$0xff]  }
  0x71   :  { %1617 = vmatpush1.bf16.msra.mxu1 %v3052_v19  ;;  %1479 = vmatprep.subr.bf16.mxu0 %v3057_v20  ;;  %v3144_v19 = vld [vmem:[#allocation2 + $0x32c] ss:$16 sps:$4 sm:$0xff]  }
  0x72   :  { %1618 = vmatprep.subr.bf16.mxu1 %v3060_v21  ;;  %v57_v20 = vld [vmem:[%s3663_s0 + $0x28] sm:$0xff] }
  0x73   :  { %v3541_v21 = vpack.c.bf16 %v57_v20, %v57_v20  ;;  %v3279_v20 = vld [vmem:[#allocation4 + $0x4] ss:$8 sps:$4 sm:$0xff]  }
  0x74   :  { %1480 = vmatpush1.bf16.msra.mxu0 %v3055_v22  ;;  %v3139_v22 = vld [vmem:[#allocation2 + $0x420] ss:$16 sps:$4 sm:$0xff]  }
  0x75   :  { %1619 = vmatpush1.bf16.msra.mxu1 %v3058_v23  ;;  %1481 = vmatprep.subr.bf16.mxu0 %v3063_v24  ;;  %v3142_v23 = vld [vmem:[#allocation2 + $0x328] ss:$16 sps:$4 sm:$0xff]   ;;  %v3147_v24 = vld [vmem:[#allocation2 + $0x444] ss:$16 sps:$4 sm:$0xff]  }
  0x76   :  { %1620 = vmatprep.subr.bf16.mxu1 %v3066_v25  ;;  %v3150_v25 = vld [vmem:[#allocation2 + $0x34c] ss:$16 sps:$4 sm:$0xff]  }
  0x78   :  { %1482 = vmatpush1.bf16.msra.mxu0 %v3061_v26  ;;  %v3145_v26 = vld [vmem:[#allocation2 + $0x440] ss:$16 sps:$4 sm:$0xff]  }
  0x79   :  { %1621 = vmatpush1.bf16.msra.mxu1 %v3064_v27  ;;  %1483 = vmatprep.subr.bf16.mxu0 %v3069_v28  ;;  %v3148_v27 = vld [vmem:[#allocation2 + $0x348] ss:$16 sps:$4 sm:$0xff]   ;;  %v3153_v28 = vld [vmem:[#allocation2 + $0x464] ss:$16 sps:$4 sm:$0xff]  }
  0x7a   :  { %1622 = vmatprep.subr.bf16.mxu1 %v3072_v29  ;;  %v3156_v29 = vld [vmem:[#allocation2 + $0x36c] ss:$16 sps:$4 sm:$0xff]  }
  0x7c   :  { %1484 = vmatpush1.bf16.msra.mxu0 %v3067_v30  ;;  %v3151_v30 = vld [vmem:[#allocation2 + $0x460] ss:$16 sps:$4 sm:$0xff]  }
  0x7d   :  { %1623 = vmatpush1.bf16.msra.mxu1 %v3070_v31  ;;  %1485 = vmatprep.subr.bf16.mxu0 %v3075_v32  ;;  %v3154_v31 = vld [vmem:[#allocation2 + $0x368] ss:$16 sps:$4 sm:$0xff]   ;;  %v3159_v32 = vld [vmem:[#allocation2 + $0x484] ss:$16 sps:$4 sm:$0xff]  }
  0x7e   :  { %1624 = vmatprep.subr.bf16.mxu1 %v3078_v33  ;;  %v3162_v33 = vld [vmem:[#allocation2 + $0x38c] ss:$16 sps:$4 sm:$0xff]  }
  0x80   :  { %1486 = vmatpush1.bf16.msra.mxu0 %v3073_v35  ;;  %v3160_v35 = vld [vmem:[#allocation2 + $0x388] ss:$16 sps:$4 sm:$0xff]  }
  0x81   :  { %1625 = vmatpush1.bf16.msra.mxu1 %v3076_v38  ;;  %1487 = vmatprep.subr.bf16.mxu0 %v3081_v39  ;;  %v3168_v38 = vld [vmem:[#allocation2 + $0x3ac] ss:$16 sps:$4 sm:$0xff]   ;;  %v3163_v39 = vld [vmem:[#allocation2 + $0x4a0] ss:$16 sps:$4 sm:$0xff]  }
  0x82   :  { %1626 = vmatprep.subr.bf16.mxu1 %v3084_v40  ;;  %v3166_v40 = vld [vmem:[#allocation2 + $0x3a8] ss:$16 sps:$4 sm:$0xff]  }
  0x84   :  { %1488 = vmatpush1.bf16.msra.mxu0 %v3079_v41  ;;  %v3171_v41 = vld [vmem:[#allocation2 + $0x4c4] ss:$16 sps:$4 sm:$0xff]  }
  0x85   :  { %1627 = vmatpush1.bf16.msra.mxu1 %v3082_v42  ;;  %1489 = vmatprep.subr.bf16.mxu0 %v3087_v43  ;;  %v3174_v42 = vld [vmem:[#allocation2 + $0x3cc] ss:$16 sps:$4 sm:$0xff]   ;;  %v3169_v43 = vld [vmem:[#allocation2 + $0x4c0] ss:$16 sps:$4 sm:$0xff]  }
  0x86   :  { %1637 = vmatprep.subr.bf16.mxu1 %v3090_v44  ;;  %v3172_v44 = vld [vmem:[#allocation2 + $0x3c8] ss:$16 sps:$4 sm:$0xff]  }
  0x88   :  { %1629 = vmatmul.mubr.bf16.vlgmr.msra.gmra.mrb[4].mxu1 %v3526_v10  ;;  %1490 = vmatpush1.bf16.msra.mxu0 %v3085_v45  ;;  %v3127_v10 = vld [vmem:[#allocation2 + $0x3e0] ss:$16 sps:$4 sm:$0xff]   ;;  %v3177_v45 = vld [vmem:[#allocation2 + $0x4e4] ss:$16 sps:$4 sm:$0xff]  }
  0x89   :  { %1638 = vmatpush1.bf16.msra.mxu1 %v3088_v46  ;;  %1491 = vmatprep.subr.bf16.mxu0 %v3093_v47  ;;  %v3180_v46 = vld [vmem:[#allocation2 + $0x3ec] ss:$16 sps:$4 sm:$0xff]   ;;  %v3175_v47 = vld [vmem:[#allocation2 + $0x4e0] ss:$16 sps:$4 sm:$0xff]  }
  0x8a   :  { %1639 = vmatprep.subr.bf16.mxu1 %v3096_v48  ;;  %1669 = vmatprep.mubr.bf16.mxu1 %v63_v37  ;;  %v3165_v37 = vld [vmem:[#allocation2 + $0x4a4] ss:$16 sps:$4 sm:$0xff]   ;;  %v3178_v48 = vld [vmem:[#allocation2 + $0x3e8] ss:$16 sps:$4 sm:$0xff]  }
  0x8c   :  { %1492 = vmatpush1.bf16.msra.mxu0 %v3091_v49  ;;  %v3183_v49 = vld [vmem:[#allocation2 + $0x504] ss:$16 sps:$4 sm:$0xff]  }
  0x8d   :  { %1640 = vmatpush1.bf16.msra.mxu1 %v3094_v50  ;;  %1493 = vmatprep.subr.bf16.mxu0 %v3099_v51  ;;  %v3186_v50 = vld [vmem:[#allocation2 + $0x40c] ss:$16 sps:$4 sm:$0xff]   ;;  %v3181_v51 = vld [vmem:[#allocation2 + $0x500] ss:$16 sps:$4 sm:$0xff]  }
  0x8e   :  { %1641 = vmatprep.subr.bf16.mxu1 %v3102_v52  ;;  %v3184_v52 = vld [vmem:[#allocation2 + $0x408] ss:$16 sps:$4 sm:$0xff]  }
  0x90   :  { %1494 = vmatpush1.bf16.msra.mxu0 %v3097_v53  ;;  %v3189_v53 = vld [vmem:[#allocation2 + $0x524] ss:$16 sps:$4 sm:$0xff]  }
  0x91   :  { %1642 = vmatpush1.bf16.msra.mxu1 %v3100_v54  ;;  %1495 = vmatprep.subr.bf16.mxu0 %v3105_v55  ;;  %v3192_v54 = vld [vmem:[#allocation2 + $0x42c] ss:$16 sps:$4 sm:$0xff]   ;;  %v3187_v55 = vld [vmem:[#allocation2 + $0x520] ss:$16 sps:$4 sm:$0xff]  }
  0x92   :  { %1643 = vmatprep.subr.bf16.mxu1 %v3108_v56  ;;  %v3190_v56 = vld [vmem:[#allocation2 + $0x428] ss:$16 sps:$4 sm:$0xff]  }
  0x94   :  { %1496 = vmatpush1.bf16.msra.mxu0 %v3103_v57  ;;  %v3195_v57 = vld [vmem:[#allocation2 + $0x544] ss:$16 sps:$4 sm:$0xff]  }
  0x95   :  { %1644 = vmatpush1.bf16.msra.mxu1 %v3106_v58  ;;  %1497 = vmatprep.subr.bf16.mxu0 %v3111_v59  ;;  %v3198_v58 = vld [vmem:[#allocation2 + $0x44c] ss:$16 sps:$4 sm:$0xff]   ;;  %v3193_v59 = vld [vmem:[#allocation2 + $0x540] ss:$16 sps:$4 sm:$0xff]  }
  0x96   :  { %1645 = vmatprep.subr.bf16.mxu1 %v3114_v60  ;;  %v3196_v60 = vld [vmem:[#allocation2 + $0x448] ss:$16 sps:$4 sm:$0xff]  }
  0x98   :  { %1498 = vmatpush1.bf16.msra.mxu0 %v3109_v61  ;;  %v3201_v61 = vld [vmem:[#allocation2 + $0x564] ss:$16 sps:$4 sm:$0xff]  }
  0x99   :  { %1646 = vmatpush1.bf16.msra.mxu1 %v3112_v62  ;;  %1499 = vmatprep.subr.bf16.mxu0 %v3117_v63  ;;  %v3204_v62 = vld [vmem:[#allocation2 + $0x46c] ss:$16 sps:$4 sm:$0xff]   ;;  %v3199_v63 = vld [vmem:[#allocation2 + $0x560] ss:$16 sps:$4 sm:$0xff]  }
  0x9a   :  { %1647 = vmatprep.subr.bf16.mxu1 %v3120_v1  ;;  %v3202_v1 = vld [vmem:[#allocation2 + $0x468] ss:$16 sps:$4 sm:$0xff]  }
  0x9c   :  { %1500 = vmatpush1.bf16.msra.mxu0 %v3115_v2  ;;  %v3207_v2 = vld [vmem:[#allocation2 + $0x584] ss:$16 sps:$4 sm:$0xff]  }
  0x9d   :  { %1648 = vmatpush1.bf16.msra.mxu1 %v3118_v3  ;;  %1501 = vmatprep.subr.bf16.mxu0 %v3123_v4  ;;  %v3210_v3 = vld [vmem:[#allocation2 + $0x48c] ss:$16 sps:$4 sm:$0xff]   ;;  %v3205_v4 = vld [vmem:[#allocation2 + $0x580] ss:$16 sps:$4 sm:$0xff]  }
  0x9e   :  { %1649 = vmatprep.subr.bf16.mxu1 %v3126_v5  ;;  %v3208_v5 = vld [vmem:[#allocation2 + $0x488] ss:$16 sps:$4 sm:$0xff]  }
  0xa0   :  { %1502 = vmatpush1.bf16.msra.mxu0 %v3121_v6  ;;  %v3213_v6 = vld [vmem:[#allocation2 + $0x5a4] ss:$16 sps:$4 sm:$0xff]  }
  0xa1   :  { %1650 = vmatpush1.bf16.msra.mxu1 %v3124_v7  ;;  %1503 = vmatprep.subr.bf16.mxu0 %v3129_v8  ;;  %v3216_v7 = vld [vmem:[#allocation2 + $0x4ac] ss:$16 sps:$4 sm:$0xff]   ;;  %v3211_v8 = vld [vmem:[#allocation2 + $0x5a0] ss:$16 sps:$4 sm:$0xff]  }
  0xa2   :  { %1651 = vmatprep.subr.bf16.mxu1 %v3132_v9  ;;  %v3214_v9 = vld [vmem:[#allocation2 + $0x4a8] ss:$16 sps:$4 sm:$0xff]  }
  0xa4   :  { %1504 = vmatpush1.bf16.msra.mxu0 %v3127_v10  ;;  %v3219_v10 = vld [vmem:[#allocation2 + $0x5c4] ss:$16 sps:$4 sm:$0xff]  }
  0xa5   :  { %1652 = vmatpush1.bf16.msra.mxu1 %v3130_v11  ;;  %1514 = vmatprep.subr.bf16.mxu0 %v3135_v13  ;;  %v3222_v11 = vld [vmem:[#allocation2 + $0x4cc] ss:$16 sps:$4 sm:$0xff]   ;;  %v3220_v13 = vld [vmem:[#allocation2 + $0x4c8] ss:$16 sps:$4 sm:$0xff]  }
  0xa6   :  { %1653 = vmatprep.subr.bf16.mxu1 %v3138_v14  ;;  %v3225_v14 = vld [vmem:[#allocation2 + $0x5e4] ss:$16 sps:$4 sm:$0xff]  }
  0xa7   :  { %1506 = vmatmul.mubr.bf16.vlgmr.msra.gmra.mrb[0].mxu0 %v3536_v16 }
  0xa8   :  { %1515 = vmatpush1.bf16.msra.mxu0 %v3133_v15  ;;  %1546 = vmatprep.mubr.bf16.mxu0 %v3541_v21  ;;  %v3228_v15 = vld [vmem:[#allocation2 + $0x4ec] ss:$16 sps:$4 sm:$0xff]  }
  0xa9   :  { %1654 = vmatpush1.bf16.msra.mxu1 %v3136_v17  ;;  %1516 = vmatprep.subr.bf16.mxu0 %v3141_v18  ;;  %v3226_v17 = vld [vmem:[#allocation2 + $0x4e8] ss:$16 sps:$4 sm:$0xff]   ;;  %v56_v18 = vld [vmem:[%s3663_s0 + $0x20] sm:$0xff] }
  0xaa   :  { %1655 = vmatprep.subr.bf16.mxu1 %v3144_v19  ;;  %v3231_v19 = vld [vmem:[#allocation2 + $0x50c] ss:$16 sps:$4 sm:$0xff]  }
  0xac   :  { %1517 = vmatpush1.bf16.msra.mxu0 %v3139_v22  ;;  %v3277_v22 = vld [vmem:[#allocation4] ss:$8 sps:$4 sm:$0xff]  }
  0xad   :  { %1656 = vmatpush1.bf16.msra.mxu1 %v3142_v23  ;;  %1518 = vmatprep.subr.bf16.mxu0 %v3147_v24  ;;  %v3550_v23 = vpack.c.bf16 %v56_v18, %v56_v18  ;;  %v3234_v24 = vld [vmem:[#allocation2 + $0x52c] ss:$16 sps:$4 sm:$0xff]  }
  0xae   :  { %1657 = vmatprep.subr.bf16.mxu1 %v3150_v25  ;;  %v3282_v25 = vld [vmem:[#allocation4 + $0x14] ss:$8 sps:$4 sm:$0xff]  }
  0xb0   :  { %1519 = vmatpush1.bf16.msra.mxu0 %v3145_v26  ;;  %v3232_v26 = vld [vmem:[#allocation2 + $0x528] ss:$16 sps:$4 sm:$0xff]  }
  0xb1   :  { %1658 = vmatpush1.bf16.msra.mxu1 %v3148_v27  ;;  %1520 = vmatprep.subr.bf16.mxu0 %v3153_v28  ;;  %v3280_v27 = vld [vmem:[#allocation4 + $0x10] ss:$8 sps:$4 sm:$0xff]   ;;  %v3237_v28 = vld [vmem:[#allocation2 + $0x54c] ss:$16 sps:$4 sm:$0xff]  }
  0xb2   :  { %1659 = vmatprep.subr.bf16.mxu1 %v3156_v29  ;;  %v3285_v29 = vld [vmem:[#allocation4 + $0x24] ss:$8 sps:$4 sm:$0xff]  }
  0xb4   :  { %1521 = vmatpush1.bf16.msra.mxu0 %v3151_v30  ;;  %v3235_v30 = vld [vmem:[#allocation2 + $0x548] ss:$16 sps:$4 sm:$0xff]  }
  0xb5   :  { %1660 = vmatpush1.bf16.msra.mxu1 %v3154_v31  ;;  %1522 = vmatprep.subr.bf16.mxu0 %v3159_v32  ;;  %v3283_v31 = vld [vmem:[#allocation4 + $0x20] ss:$8 sps:$4 sm:$0xff]   ;;  %v3240_v32 = vld [vmem:[#allocation2 + $0x56c] ss:$16 sps:$4 sm:$0xff]  }
  0xb6   :  { %1661 = vmatprep.subr.bf16.mxu1 %v3162_v33  ;;  %v3288_v33 = vld [vmem:[#allocation4 + $0x34] ss:$8 sps:$4 sm:$0xff]  }
  0xb8   :  { %1523 = vmatpush1.bf16.msra.mxu0 %v3157_v34  ;;  %v3238_v34 = vld [vmem:[#allocation2 + $0x568] ss:$16 sps:$4 sm:$0xff]  }
  0xb9   :  { %1662 = vmatpush1.bf16.msra.mxu1 %v3160_v35  ;;  %1524 = vmatprep.subr.bf16.mxu0 %v3165_v37  ;;  %v3286_v35 = vld [vmem:[#allocation4 + $0x30] ss:$8 sps:$4 sm:$0xff]   ;;  %v3243_v37 = vld [vmem:[#allocation2 + $0x58c] ss:$16 sps:$4 sm:$0xff]  }
  0xba   :  { %1663 = vmatprep.subr.bf16.mxu1 %v3168_v38  ;;  %v3291_v38 = vld [vmem:[#allocation4 + $0x44] ss:$8 sps:$4 sm:$0xff]  }
  0xbc   :  { %1525 = vmatpush1.bf16.msra.mxu0 %v3163_v39  ;;  %v3241_v39 = vld [vmem:[#allocation2 + $0x588] ss:$16 sps:$4 sm:$0xff]  }
  0xbd   :  { %1664 = vmatpush1.bf16.msra.mxu1 %v3166_v40  ;;  %1526 = vmatprep.subr.bf16.mxu0 %v3171_v41  ;;  %v3289_v40 = vld [vmem:[#allocation4 + $0x40] ss:$8 sps:$4 sm:$0xff]   ;;  %v3246_v41 = vld [vmem:[#allocation2 + $0x5ac] ss:$16 sps:$4 sm:$0xff]  }
  0xbe   :  { %1665 = vmatprep.subr.bf16.mxu1 %v3174_v42  ;;  %v3294_v42 = vld [vmem:[#allocation4 + $0x54] ss:$8 sps:$4 sm:$0xff]  }
  0xc0   :  { %1527 = vmatpush1.bf16.msra.mxu0 %v3169_v43  ;;  %v3244_v43 = vld [vmem:[#allocation2 + $0x5a8] ss:$16 sps:$4 sm:$0xff]  }
  0xc1   :  { %1666 = vmatpush1.bf16.msra.mxu1 %v3172_v44  ;;  %1528 = vmatprep.subr.bf16.mxu0 %v3177_v45  ;;  %v3292_v44 = vld [vmem:[#allocation4 + $0x50] ss:$8 sps:$4 sm:$0xff]   ;;  %v3249_v45 = vld [vmem:[#allocation2 + $0x5cc] ss:$16 sps:$4 sm:$0xff]  }
  0xc2   :  { %1667 = vmatprep.subr.bf16.mxu1 %v3180_v46  ;;  %v3297_v46 = vld [vmem:[#allocation4 + $0x64] ss:$8 sps:$4 sm:$0xff]  }
  0xc4   :  { %1529 = vmatpush1.bf16.msra.mxu0 %v3175_v47  ;;  %v3247_v47 = vld [vmem:[#allocation2 + $0x5c8] ss:$16 sps:$4 sm:$0xff]  }
  0xc5   :  { %1668 = vmatpush1.bf16.msra.mxu1 %v3178_v48  ;;  %1530 = vmatprep.subr.bf16.mxu0 %v3183_v49  ;;  %v3295_v48 = vld [vmem:[#allocation4 + $0x60] ss:$8 sps:$4 sm:$0xff]   ;;  %v3252_v49 = vld [vmem:[#allocation2 + $0x5ec] ss:$16 sps:$4 sm:$0xff]  }
  0xc6   :  { %1678 = vmatprep.subr.bf16.mxu1 %v3186_v50  ;;  %v3300_v50 = vld [vmem:[#allocation4 + $0x74] ss:$8 sps:$4 sm:$0xff]  }
  0xc8   :  { %1670 = vmatmul.mubr.bf16.vlgmr.msra.gmra.mrb[4].mxu1 %v3536_v16  ;;  %1531 = vmatpush1.bf16.msra.mxu0 %v3181_v51  ;;  %v3223_v16 = vld [vmem:[#allocation2 + $0x5e0] ss:$16 sps:$4 sm:$0xff]   ;;  %v3250_v51 = vld [vmem:[#allocation2 + $0x5e8] ss:$16 sps:$4 sm:$0xff]  }
  0xc9   :  { %1679 = vmatpush1.bf16.msra.mxu1 %v3184_v52  ;;  %1532 = vmatprep.subr.bf16.mxu0 %v3189_v53  ;;  %v3298_v52 = vld [vmem:[#allocation4 + $0x70] ss:$8 sps:$4 sm:$0xff]   ;;  %v3255_v53 = vld [vmem:[#allocation2 + $0x60c] ss:$16 sps:$4 sm:$0xff]  }
  0xca   :  { %1680 = vmatprep.subr.bf16.mxu1 %v3192_v54  ;;  %1710 = vmatprep.mubr.bf16.mxu1 %v3541_v21  ;;  %v3229_v21 = vld [vmem:[#allocation2 + $0x508] ss:$16 sps:$4 sm:$0xff]   ;;  %v3303_v54 = vld [vmem:[#allocation4 + $0x84] ss:$8 sps:$4 sm:$0xff]  }
  0xcc   :  { %1533 = vmatpush1.bf16.msra.mxu0 %v3187_v55  ;;  %v3253_v55 = vld [vmem:[#allocation2 + $0x608] ss:$16 sps:$4 sm:$0xff]  }
  0xcd   :  { %1681 = vmatpush1.bf16.msra.mxu1 %v3190_v56  ;;  %1534 = vmatprep.subr.bf16.mxu0 %v3195_v57  ;;  %v3258_v56 = vld [vmem:[#allocation2 + $0x62c] ss:$16 sps:$4 sm:$0xff]   ;;  %v3301_v57 = vld [vmem:[#allocation4 + $0x80] ss:$8 sps:$4 sm:$0xff]  }
  0xce   :  { %1682 = vmatprep.subr.bf16.mxu1 %v3198_v58  ;;  %v3306_v58 = vld [vmem:[#allocation4 + $0x94] ss:$8 sps:$4 sm:$0xff]  }
  0xd0   :  { %1535 = vmatpush1.bf16.msra.mxu0 %v3193_v59  ;;  %v3256_v59 = vld [vmem:[#allocation2 + $0x628] ss:$16 sps:$4 sm:$0xff]  }
  0xd1   :  { %1683 = vmatpush1.bf16.msra.mxu1 %v3196_v60  ;;  %1536 = vmatprep.subr.bf16.mxu0 %v3201_v61  ;;  %v3261_v60 = vld [vmem:[#allocation2 + $0x64c] ss:$16 sps:$4 sm:$0xff]   ;;  %v3304_v61 = vld [vmem:[#allocation4 + $0x90] ss:$8 sps:$4 sm:$0xff]  }
  0xd2   :  { %1684 = vmatprep.subr.bf16.mxu1 %v3204_v62  ;;  %v3309_v62 = vld [vmem:[#allocation4 + $0xa4] ss:$8 sps:$4 sm:$0xff]  }
  0xd4   :  { %1537 = vmatpush1.bf16.msra.mxu0 %v3199_v63  ;;  %v3259_v63 = vld [vmem:[#allocation2 + $0x648] ss:$16 sps:$4 sm:$0xff]  }
  0xd5   :  { %1685 = vmatpush1.bf16.msra.mxu1 %v3202_v1  ;;  %1538 = vmatprep.subr.bf16.mxu0 %v3207_v2  ;;  %v3264_v1 = vld [vmem:[#allocation2 + $0x66c] ss:$16 sps:$4 sm:$0xff]   ;;  %v3307_v2 = vld [vmem:[#allocation4 + $0xa0] ss:$8 sps:$4 sm:$0xff]  }
  0xd6   :  { %1686 = vmatprep.subr.bf16.mxu1 %v3210_v3  ;;  %v3312_v3 = vld [vmem:[#allocation4 + $0xb4] ss:$8 sps:$4 sm:$0xff]  }
  0xd8   :  { %1539 = vmatpush1.bf16.msra.mxu0 %v3205_v4  ;;  %v3262_v4 = vld [vmem:[#allocation2 + $0x668] ss:$16 sps:$4 sm:$0xff]  }
  0xd9   :  { %1687 = vmatpush1.bf16.msra.mxu1 %v3208_v5  ;;  %1540 = vmatprep.subr.bf16.mxu0 %v3213_v6  ;;  %v3267_v5 = vld [vmem:[#allocation2 + $0x68c] ss:$16 sps:$4 sm:$0xff]  }
  0xda   :  { %1688 = vmatprep.subr.bf16.mxu1 %v3216_v7  ;;  %v3315_v6 = vld [vmem:[#allocation4 + $0xc4] ss:$8 sps:$4 sm:$0xff]   ;;  %v3265_v7 = vld [vmem:[#allocation2 + $0x688] ss:$16 sps:$4 sm:$0xff]  }
  0xdc   :  { %1541 = vmatpush1.bf16.msra.mxu0 %v3211_v8  ;;  %v3270_v8 = vld [vmem:[#allocation2 + $0x6ac] ss:$16 sps:$4 sm:$0xff]  }
  0xdd   :  { %1689 = vmatpush1.bf16.msra.mxu1 %v3214_v9  ;;  %1542 = vmatprep.subr.bf16.mxu0 %v3219_v10  ;;  %v3313_v9 = vld [vmem:[#allocation4 + $0xc0] ss:$8 sps:$4 sm:$0xff]   ;;  %v3318_v10 = vld [vmem:[#allocation4 + $0xd4] ss:$8 sps:$4 sm:$0xff]  }
  0xde   :  { %1690 = vmatprep.subr.bf16.mxu1 %v3222_v11  ;;  %v3268_v11 = vld [vmem:[#allocation2 + $0x6a8] ss:$16 sps:$4 sm:$0xff]  }
  0xe0   :  { %1543 = vmatpush1.bf16.msra.mxu0 %v3217_v12  ;;  %v3273_v12 = vld [vmem:[#allocation2 + $0x6cc] ss:$16 sps:$4 sm:$0xff]  }
  0xe1   :  { %1691 = vmatpush1.bf16.msra.mxu1 %v3220_v13  ;;  %1544 = vmatprep.subr.bf16.mxu0 %v3225_v14  ;;  %v3316_v13 = vld [vmem:[#allocation4 + $0xd0] ss:$8 sps:$4 sm:$0xff]  }
  0xe2   :  { %1692 = vmatprep.subr.bf16.mxu1 %v3228_v15 }
  0xe4   :  { %1545 = vmatpush1.bf16.msra.mxu0 %v3223_v16 }
  0xe5   :  { %1693 = vmatpush1.bf16.msra.mxu1 %v3226_v17  ;;  %2165 = vmatprep.subr.bf16.mxu0 %v3279_v20  ;;  %v3271_v17 = vld [vmem:[#allocation2 + $0x6c8] ss:$16 sps:$4 sm:$0xff]  }
  0xe6   :  { %1694 = vmatprep.subr.bf16.mxu1 %v3231_v19  ;;  %v3276_v19 = vld [vmem:[#allocation2 + $0x6ec] ss:$16 sps:$4 sm:$0xff]   ;;  %v3274_v20 = vld [vmem:[#allocation2 + $0x6e8] ss:$16 sps:$4 sm:$0xff]  }
  0xe7   :  { %1547 = vmatmul.mubr.bf16.vlgmr.msra.gmra.mrb[0].mxu0 %v3550_v23 }
  0xe8   :  { %2166 = vmatpush1.bf16.msra.mxu0 %v3277_v22  ;;  %v3319_v22 = vld [vmem:[#allocation4 + $0xe0] ss:$8 sps:$4 sm:$0xff]  }
  0xe9   :  { %1695 = vmatpush1.bf16.msra.mxu1 %v3229_v21  ;;  %2167 = vmatprep.subr.bf16.mxu0 %v3282_v25  ;;  %v3321_v21 = vld [vmem:[#allocation4 + $0xe4] ss:$8 sps:$4 sm:$0xff]  }
  0xea   :  { %1696 = vmatprep.subr.bf16.mxu1 %v3234_v24  ;;  %v3322_v24 = vld [vmem:[#allocation4 + $0xf0] ss:$8 sps:$4 sm:$0xff]   ;;  %v3327_v25 = vld [vmem:[#allocation4 + $0x104] ss:$8 sps:$4 sm:$0xff]  }
  0xec   :  { %2168 = vmatpush1.bf16.msra.mxu0 %v3280_v27  ;;  %v3374_v27 = vld [vmem:[%s3666_s3] sm:$0xff]  }
  0xed   :  { %1697 = vmatpush1.bf16.msra.mxu1 %v3232_v26  ;;  %2169 = vmatprep.subr.bf16.mxu0 %v3285_v29  ;;  %v3373_v26 = vld [vmem:[%s3666_s3 + $0x40] sm:$0xff]   ;;  %v3377_v29 = vld [vmem:[%s3666_s3 + $0x50] sm:$0xff]  }
  0xee   :  { %1698 = vmatprep.subr.bf16.mxu1 %v3237_v28  ;;  %v3376_v28 = vld [vmem:[%s3666_s3 + $0x8] sm:$0xff]  }
  0xf0   :  { %2170 = vmatpush1.bf16.msra.mxu0 %v3283_v31  ;;  %v3379_v31 = vld [vmem:[%s3666_s3 + $0x58] sm:$0xff]  }
  0xf1   :  { %1699 = vmatpush1.bf16.msra.mxu1 %v3235_v30  ;;  %2171 = vmatprep.subr.bf16.mxu0 %v3288_v33  ;;  %v3378_v30 = vld [vmem:[%s3666_s3 + $0x10] sm:$0xff]   ;;  %v3381_v33 = vld [vmem:[%s3666_s3 + $0x60] sm:$0xff]  }
  0xf2   :  { %1700 = vmatprep.subr.bf16.mxu1 %v3240_v32  ;;  %v3380_v32 = vld [vmem:[%s3666_s3 + $0x18] sm:$0xff]  }
  0xf4   :  { %2172 = vmatpush1.bf16.msra.mxu0 %v3286_v35  ;;  %v3383_v35 = vld [vmem:[%s3666_s3 + $0x68] sm:$0xff]  }
  0xf5   :  { %1701 = vmatpush1.bf16.msra.mxu1 %v3238_v34  ;;  %2173 = vmatprep.subr.bf16.mxu0 %v3291_v38  ;;  %v3382_v34 = vld [vmem:[%s3666_s3 + $0x20] sm:$0xff]   ;;  %v292_v38 = vlaneseq }
  0xf6   :  { %1702 = vmatprep.subr.bf16.mxu1 %v3243_v37  ;;  %v3384_v37 = vld [vmem:[%s3666_s3 + $0x28] sm:$0xff]  }
  0xf8   :  { %2174 = vmatpush1.bf16.msra.mxu0 %v3289_v40 }
  0xf9   :  { %1703 = vmatpush1.bf16.msra.mxu1 %v3241_v39  ;;  %2175 = vmatprep.subr.bf16.mxu0 %v3294_v42  ;;  %v3592_v39 = vshrl.u32 %v292_v38, 7  ;;  %v3385_v38 = vld [vmem:[%s3666_s3 + $0x70] sm:$0xff]  }
  0xfa   :  { %1704 = vmatprep.subr.bf16.mxu1 %v3246_v41  ;;  %v3598_v41 = vld [vmem:[%s3668_s5] ss:$8 sm:$0xf] }
  0xfb   :  { %v294_v40 = vsub.s32 0, %v3592_v39  ;;  %v298_v42 = vsub.s32 1, %v3592_v39 }
  0xfc   :  { %2176 = vmatpush1.bf16.msra.mxu0 %v3292_v44 }
  0xfd   :  { %1705 = vmatpush1.bf16.msra.mxu1 %v3244_v43  ;;  %2177 = vmatprep.subr.bf16.mxu0 %v3297_v46  ;;  %v295_v43 = vrot.slane %v3598_v41, %v294_v40  ;;  %v299_v44 = vrot.slane %v3598_v41, %v298_v42 }
  0xfe   :  { %1706 = vmatprep.subr.bf16.mxu1 %v3249_v45 }
 0x100   :  { %2178 = vmatpush1.bf16.msra.mxu0 %v3295_v48 }
 0x101   :  { %1707 = vmatpush1.bf16.msra.mxu1 %v3247_v47  ;;  %2179 = vmatprep.subr.bf16.mxu0 %v3300_v50 }
 0x102   :  { %1708 = vmatprep.subr.bf16.mxu1 %v3252_v49 }
 0x104   :  { %2180 = vmatpush1.bf16.msra.mxu0 %v3298_v52 }
 0x105   :  { %1709 = vmatpush1.bf16.msra.mxu1 %v3250_v51  ;;  %2181 = vmatprep.subr.bf16.mxu0 %v3303_v54 }
 0x106   :  { %1719 = vmatprep.subr.bf16.mxu1 %v3255_v53 }
 0x108   :  { %1711 = vmatmul.mubr.bf16.vlgmr.msra.gmra.mrb[4].mxu1 %v3550_v23  ;;  %2182 = vmatpush1.bf16.msra.mxu0 %v3301_v57  ;;  %v3324_v23 = vld [vmem:[#allocation4 + $0xf4] ss:$8 sps:$4 sm:$0xff]  }
 0x109   :  { %1720 = vmatpush1.bf16.msra.mxu1 %v3253_v55  ;;  %1751 = vmatprep.mubr.bf16.mxu1 %v3451_v0  ;;  %v3310_v0 = vld [vmem:[#allocation4 + $0xb0] ss:$8 sps:$4 sm:$0xff]  }
 0x10a   :  { %1721 = vmatprep.subr.bf16.mxu1 %v3258_v56  ;;  %2183 = vmatprep.subr.bf16.mxu0 %v3306_v58  ;;  %v3325_v56 = vld [vmem:[#allocation4 + $0x100] ss:$8 sps:$4 sm:$0xff]   ;;  %v3330_v58 = vld [vmem:[#allocation4 + $0x114] ss:$8 sps:$4 sm:$0xff]  }
 0x10c   :  { %2184 = vmatpush1.bf16.msra.mxu0 %v3304_v61  ;;  %v3331_v61 = vld [vmem:[#allocation4 + $0x120] ss:$8 sps:$4 sm:$0xff]  }
 0x10d   :  { %1722 = vmatpush1.bf16.msra.mxu1 %v3256_v59  ;;  %2185 = vmatprep.subr.bf16.mxu0 %v3309_v62  ;;  %v3328_v59 = vld [vmem:[#allocation4 + $0x110] ss:$8 sps:$4 sm:$0xff]   ;;  %v3336_v62 = vld [vmem:[#allocation4 + $0x134] ss:$8 sps:$4 sm:$0xff]  }
 0x10e   :  { %1723 = vmatprep.subr.bf16.mxu1 %v3261_v60  ;;  %v3333_v60 = vld [vmem:[#allocation4 + $0x124] ss:$8 sps:$4 sm:$0xff]  }
 0x110   :  { %2186 = vmatpush1.bf16.msra.mxu0 %v3307_v2  ;;  %v3337_v2 = vld [vmem:[#allocation4 + $0x140] ss:$8 sps:$4 sm:$0xff]  }
 0x111   :  { %1724 = vmatpush1.bf16.msra.mxu1 %v3259_v63  ;;  %2187 = vmatprep.subr.bf16.mxu0 %v3312_v3  ;;  %v3334_v63 = vld [vmem:[#allocation4 + $0x130] ss:$8 sps:$4 sm:$0xff]   ;;  %v3342_v3 = vld [vmem:[#allocation4 + $0x154] ss:$8 sps:$4 sm:$0xff]  }
 0x112   :  { %1725 = vmatprep.subr.bf16.mxu1 %v3264_v1  ;;  %v3339_v1 = vld [vmem:[#allocation4 + $0x144] ss:$8 sps:$4 sm:$0xff]  }
 0x114   :  { %2188 = vmatpush1.bf16.msra.mxu0 %v3310_v0  ;;  %v3343_v0 = vld [vmem:[#allocation4 + $0x160] ss:$8 sps:$4 sm:$0xff]  }
 0x115   :  { %1726 = vmatpush1.bf16.msra.mxu1 %v3262_v4  ;;  %2189 = vmatprep.subr.bf16.mxu0 %v3315_v6  ;;  %v3340_v4 = vld [vmem:[#allocation4 + $0x150] ss:$8 sps:$4 sm:$0xff]   ;;  %v3348_v6 = vld [vmem:[#allocation4 + $0x174] ss:$8 sps:$4 sm:$0xff]  }
 0x116   :  { %1727 = vmatprep.subr.bf16.mxu1 %v3267_v5  ;;  %v3345_v5 = vld [vmem:[#allocation4 + $0x164] ss:$8 sps:$4 sm:$0xff]  }
 0x118   :  { %2190 = vmatpush1.bf16.msra.mxu0 %v3313_v9  ;;  %v3349_v9 = vld [vmem:[#allocation4 + $0x180] ss:$8 sps:$4 sm:$0xff]  }
 0x119   :  { %1728 = vmatpush1.bf16.msra.mxu1 %v3265_v7  ;;  %2191 = vmatprep.subr.bf16.mxu0 %v3318_v10  ;;  %v3346_v7 = vld [vmem:[#allocation4 + $0x170] ss:$8 sps:$4 sm:$0xff]   ;;  %v3354_v10 = vld [vmem:[#allocation4 + $0x194] ss:$8 sps:$4 sm:$0xff]  }
 0x11a   :  { %1729 = vmatprep.subr.bf16.mxu1 %v3270_v8  ;;  %v3351_v8 = vld [vmem:[#allocation4 + $0x184] ss:$8 sps:$4 sm:$0xff]  }
 0x11b   :  { %v1589_v14 = vpop.f32.mrb[0].mxu1 }
 0x11c   :  { %v1591_v15 = vpop.f32.mrb[1].mxu1  ;;  %2192 = vmatpush1.bf16.msra.mxu0 %v3316_v13  ;;  %v3355_v13 = vld [vmem:[#allocation4 + $0x1a0] ss:$8 sps:$4 sm:$0xff]  }
 0x11d   :  { %v1593_v16 = vpop.f32.mrb[2].mxu1  ;;  %1730 = vmatpush1.bf16.msra.mxu1 %v3268_v11  ;;  %2193 = vmatprep.subr.bf16.mxu0 %v3321_v21  ;;  %v3352_v11 = vld [vmem:[#allocation4 + $0x190] ss:$8 sps:$4 sm:$0xff]  }
 0x11e   :  { %v1594_v18 = vpop.f32.mrb[3].mxu1  ;;  %1731 = vmatprep.subr.bf16.mxu1 %v3273_v12  ;;  %v3357_v12 = vld [vmem:[#allocation4 + $0x1a4] ss:$8 sps:$4 sm:$0xff]   ;;  %v3364_v21 = vld [vmem:[#allocation4 + $0x1d0] ss:$8 sps:$4 sm:$0xff]  }
 0x11f   :  { %v3363_v16 = vld [vmem:[#allocation4 + $0x1c4] ss:$8 sps:$4 sm:$0xff]   ;;  %v3366_v18 = vld [vmem:[#allocation4 + $0x1d4] ss:$8 sps:$4 sm:$0xff]  }
 0x120   :  { %2194 = vmatpush1.bf16.msra.mxu0 %v3319_v22 }
 0x121   :  { %1732 = vmatpush1.bf16.msra.mxu1 %v3271_v17  ;;  %2195 = vmatprep.subr.bf16.mxu0 %v3324_v23  ;;  %v3361_v17 = vld [vmem:[#allocation4 + $0x1c0] ss:$8 sps:$4 sm:$0xff]   ;;  %v3369_v23 = vld [vmem:[#allocation4 + $0x1e4] ss:$8 sps:$4 sm:$0xff]  }
 0x122   :  { %1733 = vmatprep.subr.bf16.mxu1 %v3276_v19  ;;  %v302_v19 = vsub.s32 2, %v3592_v39 }
 0x124   :  { %2196 = vmatpush1.bf16.msra.mxu0 %v3322_v24  ;;  %v303_v22 = vrot.slane %v3598_v41, %v302_v19 }
 0x125   :  { %1734 = vmatpush1.bf16.msra.mxu1 %v3274_v20  ;;  %2206 = vmatprep.subr.bf16.mxu0 %v3327_v25  ;;  %v306_v20 = vsub.s32 3, %v3592_v39  ;;  %v3390_v39 = vld [vmem:[%s3667_s4 + $0x8] sm:$0xff]  }
 0x126   :  { %2849 = vmatprep.subr.bf16.mxu1 %v3373_v26  ;;  %v3367_v26 = vld [vmem:[#allocation4 + $0x1e0] ss:$8 sps:$4 sm:$0xff]  }
 0x127   :  { %v307_v24 = vrot.slane %v3598_v41, %v306_v20  ;;  %v3386_v41 = vld [vmem:[%s3666_s3 + $0x30] sm:$0xff]  }
 0x128   :  { %1752 = vmatmul.mubr.bf16.vlgmr.msra.gmra.mrb[4].mxu1 %v3517_v36  ;;  %v3375_v36 = vld [vmem:[%s3666_s3 + $0x48] sm:$0xff]  }
 0x129   :  { %2850 = vmatpush3.bf16.msra.mxu1 %v3374_v27 }
 0x12a   :  { %2851 = vmatprep.subr.bf16.mxu1 %v3375_v36 }
 0x12d   :  { %2852 = vmatpush3.bf16.msra.mxu1 %v3376_v28  ;;  %v3372_v28 = vld [vmem:[#allocation4 + $0x1f4] ss:$8 sps:$4 sm:$0xff]  }
 0x12e   :  { %2853 = vmatprep.subr.bf16.mxu1 %v3377_v29 }
 0x131   :  { %2854 = vmatpush3.bf16.msra.mxu1 %v3378_v30 }
 0x132   :  { %2855 = vmatprep.subr.bf16.mxu1 %v3379_v31 }
 0x135   :  { %2856 = vmatpush3.bf16.msra.mxu1 %v3380_v32 }
 0x136   :  { %2857 = vmatprep.subr.bf16.mxu1 %v3381_v33  ;;  %v3370_v33 = vld [vmem:[#allocation4 + $0x1f0] ss:$8 sps:$4 sm:$0xff]  }
 0x139   :  { %2858 = vmatpush3.bf16.msra.mxu1 %v3382_v34 }
 0x13a   :  { %2859 = vmatprep.subr.bf16.mxu1 %v3383_v35 }
 0x13d   :  { %2860 = vmatpush3.bf16.msra.mxu1 %v3384_v37 }
 0x13e   :  { %2861 = vmatprep.subr.bf16.mxu1 %v3385_v38 }
 0x141   :  { %2862 = vmatpush3.bf16.msra.mxu1 %v3386_v41 }
 0x1ba   :  { %v1548_v45 = vpop.f32.mrb[0].mxu0 }
 0x1bb   :  { %v2900_v46 = vadd.f32 %v1548_v45, %v295_v43  ;;  %v1550_v47 = vpop.f32.mrb[1].mxu0  ;;  %v3387_v43 = vld [vmem:[%s3666_s3 + $0x78] sm:$0xff]   ;;  %v3452_v45 = vmov 0.0  }
 0x1bc   :  { %v2902_v48 = vadd.f32 %v1550_v47, %v299_v44  ;;  %v1552_v49 = vpop.f32.mrb[2].mxu0  ;;  %v3388_v44 = vld [vmem:[%s3666_s3 + $0x38] sm:$0xff]   ;;  %2863 = vmatprep.subr.bf16.mxu1 %v3387_v43 }
 0x1bd   :  { %v2901_v50 = vadd.f32 %v2900_v46, %v1589_v14  ;;  %v1553_v51 = vpop.f32.mrb[3].mxu0  ;;  %v3360_v14 = vld [vmem:[#allocation4 + $0x1b4] ss:$8 sps:$4 sm:$0xff]   ;;  %2864 = vmatpush3.bf16.msra.mxu1 %v3388_v44  ;;  %v2760_v46 = vld [vmem:[%s3668_s5 + $0x1] ss:$8 sm:$0x3] }
 0x1be   :  { %v2903_v52 = vadd.f32 %v2902_v48, %v1591_v15  ;;  %v3358_v15 = vld [vmem:[#allocation4 + $0x1b0] ss:$8 sps:$4 sm:$0xff]   ;;  %2880 = vmatprep.subr.bf16.mxu1 %v3452_v45  ;;  %v1838_v47 = vrot.slane %v2760_v46, %v294_v40  ;;  %v1842_v48 = vrot.slane %v2760_v46, %v298_v42 }
 0x1bf   :  { %v1760_v53 = vmax.f32 %v2901_v50, 0.0  ;;  %v3391_v40 = vld [vmem:[%s3667_s4 + $0x10] sm:$0xff]   ;;  %v3392_v42 = vld [vmem:[%s3667_s4 + $0x18] sm:$0xff]  }
 0x1c0   :  { %v1761_v54 = vmax.f32 %v2903_v52, 0.0 }
 0x1c1   :  { %v1766_v57 = vpack.c.bf16 %v1760_v53, %v1760_v53 }
 0x1c2   :  { %v1767_v55 = vpack.c.bf16 %v1761_v54, %v1761_v54 }
 0x1c4   :  { %2197 = vmatprep.mubr.bf16.mxu0 %v1767_v55 }
 0x1c5   :  { %2198 = vmatmul.mubr.bf16.vlgmr.msra.gmra.mrb[4].mxu0 %v1766_v57 }
 0x1c6   :  { %2207 = vmatpush1.bf16.msra.mxu0 %v3325_v56 }
 0x1c7   :  { %2208 = vmatprep.subr.bf16.mxu0 %v3330_v58  ;;  %v3389_v58 = vld [vmem:[%s3667_s4] sm:$0xff]  }
 0x1ca   :  { %2209 = vmatpush1.bf16.msra.mxu0 %v3328_v59 }
 0x1cb   :  { %2210 = vmatprep.subr.bf16.mxu0 %v3333_v60  ;;  %v3393_v60 = vld [vmem:[%s3667_s4 + $0x20] sm:$0xff]  }
 0x1ce   :  { %2211 = vmatpush1.bf16.msra.mxu0 %v3331_v61  ;;  %v3394_v61 = vld [vmem:[%s3667_s4 + $0x28] sm:$0xff]  }
 0x1cf   :  { %2212 = vmatprep.subr.bf16.mxu0 %v3336_v62  ;;  %v3395_v62 = vld [vmem:[%s3667_s4 + $0x30] sm:$0xff]  }
 0x1d2   :  { %2213 = vmatpush1.bf16.msra.mxu0 %v3334_v63  ;;  %v3396_v63 = vld [vmem:[%s3667_s4 + $0x38] sm:$0xff]  }
 0x1d3   :  { %2214 = vmatprep.subr.bf16.mxu0 %v3339_v1 }
 0x1d6   :  { %2215 = vmatpush1.bf16.msra.mxu0 %v3337_v2  ;;  %v2249_v2 = vld [vmem:[%s3668_s5 + $0x2] ss:$0 sm:$0xff] }
 0x1d7   :  { %2216 = vmatprep.subr.bf16.mxu0 %v3342_v3 }
 0x1da   :  { %2217 = vmatpush1.bf16.msra.mxu0 %v3340_v4 }
 0x1db   :  { %2218 = vmatprep.subr.bf16.mxu0 %v3345_v5 }
 0x1de   :  { %2219 = vmatpush1.bf16.msra.mxu0 %v3343_v0 }
 0x1df   :  { %2220 = vmatprep.subr.bf16.mxu0 %v3348_v6 }
 0x1e2   :  { %2221 = vmatpush1.bf16.msra.mxu0 %v3346_v7 }
 0x1e3   :  { %2222 = vmatprep.subr.bf16.mxu0 %v3351_v8 }
 0x1e6   :  { %2223 = vmatpush1.bf16.msra.mxu0 %v3349_v9  ;;  %v2421_v9 = vld [vmem:[%s3668_s5 + $0x3] ss:$0 sm:$0xff] }
 0x1e7   :  { %2224 = vmatprep.subr.bf16.mxu0 %v3354_v10 }
 0x1ea   :  { %2225 = vmatpush1.bf16.msra.mxu0 %v3352_v11 }
 0x1eb   :  { %2226 = vmatprep.subr.bf16.mxu0 %v3357_v12 }
 0x1ee   :  { %2227 = vmatpush1.bf16.msra.mxu0 %v3355_v13 }
 0x1ef   :  { %2228 = vmatprep.subr.bf16.mxu0 %v3360_v14 }
 0x1f2   :  { %2229 = vmatpush1.bf16.msra.mxu0 %v3358_v15 }
 0x1f3   :  { %2230 = vmatprep.subr.bf16.mxu0 %v3363_v16 }
 0x1f6   :  { %2231 = vmatpush1.bf16.msra.mxu0 %v3361_v17 }
 0x1f7   :  { %2232 = vmatprep.subr.bf16.mxu0 %v3366_v18 }
 0x1fa   :  { %2233 = vmatpush1.bf16.msra.mxu0 %v3364_v21 }
 0x1fb   :  { %v1753_v25 = vpop.f32.mrb[4].mxu1  ;;  %2234 = vmatprep.subr.bf16.mxu0 %v3369_v23 }
 0x1fc   :  { %v2904_v27 = vadd.f32 %v1753_v25, %v303_v22  ;;  %v1755_v36 = vpop.f32.mrb[5].mxu1 }
 0x1fd   :  { %v2905_v29 = vadd.f32 %v1755_v36, %v307_v24  ;;  %v1757_v30 = vpop.f32.mrb[6].mxu1 }
 0x1fe   :  { %v1758_v31 = vpop.f32.mrb[7].mxu1  ;;  %2235 = vmatpush1.bf16.msra.mxu0 %v3367_v26  ;;  %v1762_v34 = vmax.f32 %v2904_v27, 0.0 }
 0x1ff   :  { %v1763_v32 = vmax.f32 %v2905_v29, 0.0  ;;  %2236 = vmatprep.subr.bf16.mxu0 %v3372_v28 }
 0x200   :  { %v1768_v37 = vpack.c.bf16 %v1762_v34, %v1762_v34 }
 0x201   :  { %v1769_v35 = vpack.c.bf16 %v1763_v32, %v1763_v32 }
 0x202   :  { %2237 = vmatpush1.bf16.msra.mxu0 %v3370_v33 }
 0x203   :  { %2238 = vmatprep.mubr.bf16.mxu0 %v1769_v35 }
 0x205   :  { %2239 = vmatmul.mubr.bf16.vlgmr.msra.gmra.mrb[4].mxu0 %v1768_v37 }
 0x2d8   :  { %v2240_v49 = vpop.f32.mrb[4].mxu0 }
 0x2d9   :  { %v2906_v50 = vadd.f32 %v2240_v49, %v1838_v47  ;;  %v2242_v51 = vpop.f32.mrb[5].mxu0 }
 0x2da   :  { %v2907_v52 = vadd.f32 %v2242_v51, %v1842_v48  ;;  %v2244_v53 = vpop.f32.mrb[6].mxu0 }
 0x2db   :  { %v2247_v54 = vmax.f32 %v2906_v50, 0.0  ;;  %v2245_v55 = vpop.f32.mrb[7].mxu0 }
 0x2dc   :  { %v2248_v56 = vmax.f32 %v2907_v52, 0.0 }
 0x2dd   :  { %v2250_v59 = vpack.c.bf16 %v2247_v54, %v2247_v54 }
 0x2de   :  { %v2251_v57 = vpack.c.bf16 %v2248_v56, %v2248_v56 }
 0x2e0   :  { %2412 = vmatprep.mubr.bf16.mxu1 %v2251_v57 }
 0x2e1   :  { %2413 = vmatmul.mubr.bf16.vlgmr.msra.gmra.mrb[8].mxu1 %v2250_v59 }
 0x2e2   :  { %2881 = vmatpush3.bf16.msra.mxu1 %v3389_v58  ;;  %2896 = vmatprep.mubr.msk.bf16.mxu1 %vm3453_vm0, %v3452_v45 }
 0x2e3   :  { %2882 = vmatprep.subr.bf16.mxu1 %v3452_v45 }
 0x2e6   :  { %2883 = vmatpush3.bf16.msra.mxu1 %v3390_v39 }
 0x2e7   :  { %2884 = vmatprep.subr.bf16.mxu1 %v3452_v45 }
 0x2ea   :  { %2885 = vmatpush3.bf16.msra.mxu1 %v3391_v40 }
 0x2eb   :  { %2886 = vmatprep.subr.bf16.mxu1 %v3452_v45 }
 0x2ee   :  { %2887 = vmatpush3.bf16.msra.mxu1 %v3392_v42 }
 0x2ef   :  { %2888 = vmatprep.subr.bf16.mxu1 %v3452_v45 }
 0x2f2   :  { %2889 = vmatpush3.bf16.msra.mxu1 %v3393_v60 }
 0x2f3   :  { %2890 = vmatprep.subr.bf16.mxu1 %v3452_v45 }
 0x2f6   :  { %2891 = vmatpush3.bf16.msra.mxu1 %v3394_v61 }
 0x2f7   :  { %2892 = vmatprep.subr.bf16.mxu1 %v3452_v45 }
 0x2fa   :  { %2893 = vmatpush3.bf16.msra.mxu1 %v3395_v62 }
 0x2fb   :  { %2894 = vmatprep.subr.bf16.mxu1 %v3452_v45 }
 0x2fe   :  { %2895 = vmatpush3.bf16.msra.mxu1 %v3396_v63 }
 0x3b4   :  { %v2865_v1 = vpop.f32.mrb[8].mxu1 }
 0x3b5   :  { %v2866_v3 = vpop.f32.mrb[9].mxu1 }
 0x3b6   :  { %v2867_v4 = vadd.f32 %v2866_v3, %v2865_v1  ;;  %v2868_v5 = vpop.f32.mrb[10].mxu1 }
 0x3b7   :  { %v2869_v0 = vpop.f32.mrb[11].mxu1 }
 0x3b8   :  { %v2415_v6 = vadd.f32 %v2867_v4, %v2249_v2 }
 0x3ba   :  { %v2420_v7 = vmax.f32 %v2415_v6, 0.0 }
 0x3bc   :  { %v2422_v8 = vpack.c.bf16 %v2420_v7, %v2420_v7 }
 0x3be   :  { %2897 = vmatmul.mubr.bf16.vlgmr.msra.gmra.mrb[12].mxu1 %v2422_v8 }
 0x491   :  { %v2521_v10 = vpop.f32.mrb[12].mxu1 }
 0x492   :  { %v2522_v11 = vadd.f32 %v2521_v10, %v2421_v9  ;;  %v2898_v12 = vpop.f32.mrb[13].mxu1 }
 0x493   :  { %v2524_v13 = vpop.f32.mrb[14].mxu1 }
 0x494   :  { %v2527_v14 = vmax.f32 %v2522_v11, 0.0  ;;  %v2899_v15 = vpop.f32.mrb[15].mxu1 }
 0x496   :  { %2529 = vst.msk [vmem:[%s3669_s6] sm:$0xff] %vm2528_vm1, %v2527_v14 }
 0x497   :  { %2534 = vsyncpa [#allocation3], 1 }
 0x498   :  { %2535 = vsyncpa [#allocation5], 1 }

</bundles_post_ra>
